<compile_context>
chip_gen: v6e
topology: v6e:2x2x1
jax: 0.10.0
libtpu: 0.0.40
codegen_flags: <defaults>
</compile_context>

<pallas_src>
import jax
import jax.numpy as jnp
from jax import lax
from jax.experimental import pallas as pl
from jax.experimental.pallas import tpu as pltpu

EPS = 1e-9


def _recip(x):
    # Approx EUP reciprocal + one Newton step (cheap VPU) -> ~f32 accuracy.
    r = pl.reciprocal(x, approx=True)
    return r * (2.0 - x * r)


def _corr_loss_kernel(coef_ref, index_ref,                       # SMEM (3,), (B,)
                      ow_ref, os_ref, owm_ref, osm_ref, plm_ref,  # (B, C)
                      fw_ref, fs_ref,                             # (B, D)
                      fm_ref,                                     # (1, D) old feat_mean
                      w_ref, b_ref,                               # (C, D), (1, C)
                      conf_in_ref, init_conf_ref,                 # (N, C) HBM
                      loss_ref, newfm_ref, conf_out_ref,          # outputs
                      tgt_buf, itg_buf, newtgt_buf, dsem):        # scratch
    B, C = ow_ref.shape
    inv_B = 1.0 / B
    m_old = coef_ref[0]
    one_minus_m = coef_ref[1]
    mixup = coef_ref[2]

    # ---- in-kernel gather of confidence / init_confidence rows --------------
    for i in range(B):
        idx = index_ref[i]
        pltpu.make_async_copy(conf_in_ref.at[pl.ds(idx, 1), :],
                              tgt_buf.at[pl.ds(i, 1), :], dsem.at[0]).start()
        pltpu.make_async_copy(init_conf_ref.at[pl.ds(idx, 1), :],
                              itg_buf.at[pl.ds(i, 1), :], dsem.at[0]).start()
    for i in range(B):
        pltpu.make_async_copy(conf_in_ref.at[pl.ds(0, 1), :],
                              tgt_buf.at[pl.ds(i, 1), :], dsem.at[0]).wait()
        pltpu.make_async_copy(init_conf_ref.at[pl.ds(0, 1), :],
                              itg_buf.at[pl.ds(i, 1), :], dsem.at[0]).wait()

    # ---- one exp pass per logit tensor ---------------------------------------
    def softmax_parts(ref):
        x = ref[...].astype(jnp.float32)
        ctr = x - jnp.max(x, axis=1, keepdims=True)
        e = jnp.exp(ctr)
        s = jnp.sum(e, axis=1, keepdims=True)
        return e, s, ctr

    e_w, s_w, c_w = softmax_parts(ow_ref)
    e_s, s_s, c_s = softmax_parts(os_ref)
    e_wm, s_wm, c_wm = softmax_parts(owm_ref)
    e_sm, s_sm, c_sm = softmax_parts(osm_ref)

    target = tgt_buf[...].astype(jnp.float32)
    plm = plm_ref[...].astype(jnp.float32)

    inv_sw, inv_ss = _recip(s_w), _recip(s_s)
    inv_swm, inv_ssm = _recip(s_wm), _recip(s_sm)

    # (1 - pred) as (s - e)/s: non-negative, abs-free, no cancellation.
    om_pw = (s_w - e_w) * inv_sw
    om_ps = (s_s - e_s) * inv_ss
    om_pwm = (s_wm - e_wm) * inv_swm
    om_psm = (s_sm - e_sm) * inv_ssm

    # one per-row log per branch, shared by both KL terms of that branch
    log_ss = jnp.log(s_w * s_s)
    log_ssm = jnp.log(s_wm * s_sm)

    neg = (target == 0.0).astype(jnp.float32)
    neg2 = (plm == 0.0).astype(jnp.float32)

    # ---- fused elementwise loss contribution, single reduction ---------------
    sup_elem = -neg * jnp.log((om_pw + EPS) * (om_ps + EPS))
    sup_elem2 = -neg2 * jnp.log((om_pwm + EPS) * (om_psm + EPS))

    safe_t = jnp.where(target > 0.0, target, 1.0)
    kl_elem = jnp.where(
        target > 0.0,
        target * (2.0 * jnp.log(safe_t) - c_w - c_s + log_ss),
        0.0)
    safe_p = jnp.where(plm > 0.0, plm, 1.0)
    kl_elem2 = jnp.where(
        plm > 0.0,
        plm * (2.0 * jnp.log(safe_p) - c_wm - c_sm + log_ssm),
        0.0)

    loss_elem = sup_elem + kl_elem + mixup * (sup_elem2 + kl_elem2)
    loss_ref[0, 0] = jnp.sum(loss_elem) * inv_B

    # ---- feature-mean EMA -----------------------------------------------------
    fw = fw_ref[...].astype(jnp.float32)
    fs = fs_ref[...].astype(jnp.float32)
    batch_mean = jnp.sum(fw + fs, axis=0, keepdims=True) * (0.5 * inv_B)  # (1, D)
    new_fm = m_old * fm_ref[...].astype(jnp.float32) + one_minus_m * batch_mean
    newfm_ref[...] = new_fm

    # ---- debiased predictions & target revision -------------------------------
    # fc_weight is (C, D): contract on D (a @ W^T), tiny M=1 matmul.
    bias_logits = lax.dot_general(
        new_fm, w_ref[...].astype(jnp.float32),
        dimension_numbers=(((1,), (1,)), ((), ())),
        preferred_element_type=jnp.float32) + b_ref[...].astype(jnp.float32)
    bl = bias_logits - jnp.max(bias_logits, axis=1, keepdims=True)
    e_b = jnp.exp(bl)
    bias = e_b * _recip(jnp.sum(e_b, axis=1, keepdims=True))              # (1, C)
    inv_bias = _recip(bias + EPS)                                         # 1/(bias+eps)

    # softmax(x - log(bias+eps)) == normalize(exp(x - max_x) / (bias+eps))
    num_s = e_s * inv_bias
    num_w = e_w * inv_bias
    pred_s2 = num_s * _recip(jnp.sum(num_s, axis=1, keepdims=True))
    pred_w2 = num_w * _recip(jnp.sum(num_w, axis=1, keepdims=True))

    init_target = itg_buf[...].astype(jnp.float32)
    revisedY = jnp.where(init_target > 0.0, 1.0, init_target)
    r = (revisedY * pred_s2) * (revisedY * pred_w2)
    r = r * _recip(jnp.sum(r, axis=1, keepdims=True) + EPS)
    r = jnp.sqrt(r)
    r = r * _recip(jnp.sum(r, axis=1, keepdims=True) + EPS)
    newtgt_buf[...] = r

    # ---- in-kernel scatter of revised rows into the aliased confidence table --
    for i in range(B):
        idx = index_ref[i]
        pltpu.make_async_copy(newtgt_buf.at[pl.ds(i, 1), :],
                              conf_out_ref.at[pl.ds(idx, 1), :], dsem.at[1]).start()
    for i in range(B):
        pltpu.make_async_copy(newtgt_buf.at[pl.ds(i, 1), :],
                              conf_out_ref.at[pl.ds(0, 1), :], dsem.at[1]).wait()


def corr_loss_records_mixup(output_w, output_s, output_w_mix, output_s_mix,
                            feat_w, feat_s, fc_weight, fc_bias,
                            index, pseudo_label_mix,
                            confidence, init_confidence, feat_mean,
                            m=0.9, mixup=0.5):
    B, C = output_w.shape
    D = feat_w.shape[1]
    N = confidence.shape[0]

    confidence = confidence.astype(jnp.float32)
    init_confidence = init_confidence.astype(jnp.float32)

    if feat_mean is None:
        fm_old = jnp.zeros((1, D), jnp.float32)
        m_old = 0.0
    else:
        fm_old = feat_mean.reshape(1, D).astype(jnp.float32)
        m_old = float(m)

    coefs = jnp.array([m_old, 1.0 - m, mixup], jnp.float32)
    index_i32 = index.astype(jnp.int32)
    fc_bias2 = fc_bias.reshape(1, C)

    vmem = pl.BlockSpec(memory_space=pltpu.MemorySpace.VMEM)
    smem = pl.BlockSpec(memory_space=pltpu.MemorySpace.SMEM)
    anymem = pl.BlockSpec(memory_space=pl.ANY)

    loss, new_fm, new_conf = pl.pallas_call(
        _corr_loss_kernel,
        out_shape=(jax.ShapeDtypeStruct((1, 1), jnp.float32),
                   jax.ShapeDtypeStruct((1, D), jnp.float32),
                   jax.ShapeDtypeStruct((N, C), jnp.float32)),
        in_specs=[smem, smem,                       # coefs, index
                  vmem, vmem, vmem, vmem, vmem,     # ow, os, owm, osm, plm
                  vmem, vmem, vmem,                 # fw, fs, fm_old
                  vmem, vmem,                       # fc_weight, fc_bias
                  anymem, anymem],                  # confidence, init_confidence (HBM)
        out_specs=(smem, vmem, anymem),
        scratch_shapes=[pltpu.VMEM((B, C), jnp.float32),    # gathered target rows
                        pltpu.VMEM((B, C), jnp.float32),    # gathered init rows
                        pltpu.VMEM((B, C), jnp.float32),    # revised target rows
                        pltpu.SemaphoreType.DMA((2,))],
        input_output_aliases={12: 2},               # confidence table updated in place
        compiler_params=pltpu.CompilerParams(vmem_limit_bytes=32 << 20),
    )(coefs, index_i32, output_w, output_s, output_w_mix, output_s_mix,
      pseudo_label_mix, feat_w, feat_s, fm_old, fc_weight, fc_bias2,
      confidence, init_confidence)

    return loss[0, 0], new_fm[0, :], new_conf


# ----------------------------- reference (pure JAX) -------------------------
def _reference(output_w, output_s, output_w_mix, output_s_mix, feat_w, feat_s,
               fc_weight, fc_bias, index, pseudo_label_mix,
               confidence, init_confidence, feat_mean, m, mixup):
    eps = 1e-9
    B = output_w.shape[0]
    target = confidence[index]
    pred_s = jax.nn.softmax(output_s, axis=1)
    pred_w = jax.nn.softmax(output_w, axis=1)
    neg = (target == 0).astype(jnp.float32)
    sup1 = jnp.sum(neg * (-jnp.log(jnp.abs(1 - pred_w) + eps)
                          - jnp.log(jnp.abs(1 - pred_s) + eps))) / B

    def kl(logits, t):
        lp = jax.nn.log_softmax(logits, axis=1)
        safe_t = jnp.where(t > 0, t, 1.0)
        return jnp.sum(jnp.where(t > 0, t * (jnp.log(safe_t) - lp), 0.0)) / B

    con = kl(output_w, target) + kl(output_s, target)
    psm = jax.nn.softmax(output_s_mix, axis=1)
    pwm = jax.nn.softmax(output_w_mix, axis=1)
    neg2 = (pseudo_label_mix == 0).astype(jnp.float32)
    sup2 = jnp.sum(neg2 * (-jnp.log(jnp.abs(1 - pwm) + eps)
                           - jnp.log(jnp.abs(1 - psm) + eps))) / B
    con2 = kl(output_w_mix, pseudo_label_mix) + kl(output_s_mix, pseudo_label_mix)
    loss = sup1 + con + mixup * (sup2 + con2)

    bm = jnp.mean((feat_w + feat_s) / 2, axis=0)
    fm = (1 - m) * bm if feat_mean is None else m * feat_mean + (1 - m) * bm
    bias = jax.nn.softmax(fm[None] @ fc_weight.T + fc_bias[None], axis=1)
    lb = jnp.log(bias + eps)
    ps2 = jax.nn.softmax(output_s - lb, axis=1)
    pw2 = jax.nn.softmax(output_w - lb, axis=1)
    init_t = init_confidence[index]
    rY = jnp.where(init_t > 0, 1.0, init_t)
    r = (rY * ps2) * (rY * pw2)
    r = r / (jnp.sum(r, axis=1, keepdims=True) + eps)
    r = jnp.sqrt(r)
    r = r / (jnp.sum(r, axis=1, keepdims=True) + eps)
    return loss, fm, confidence.at[index].set(r)


if __name__ == "__main__":
    key = jax.random.PRNGKey(0)
    B, C, D, N = 8, 16, 32, 64     # batch, classes, feat_dim, dataset size
    ks = jax.random.split(key, 12)

    output_w = jax.random.normal(ks[0], (B, C), jnp.float32)
    output_s = jax.random.normal(ks[1], (B, C), jnp.float32)
    output_w_mix = jax.random.normal(ks[2], (B, C), jnp.float32)
    output_s_mix = jax.random.normal(ks[3], (B, C), jnp.float32)
    feat_w = jax.random.normal(ks[4], (B, D), jnp.float32)
    feat_s = jax.random.normal(ks[5], (B, D), jnp.float32)

    # deterministic synthetic fc head (Linear(D, C))
    fc_weight = 0.1 * jax.random.normal(ks[6], (C, D), jnp.float32)
    fc_bias = jnp.zeros((C,), jnp.float32)

    # candidate-label style confidence table (rows sum to 1, zeros elsewhere)
    cand = (jax.random.uniform(ks[7], (N, C)) < 0.3).astype(jnp.float32)
    true_lbl = jax.random.randint(ks[8], (N,), 0, C)
    cand = cand.at[jnp.arange(N), true_lbl].set(1.0)
    confidence = cand / jnp.sum(cand, axis=1, keepdims=True)
    init_confidence = confidence

    index = jax.random.permutation(ks[9], N)[:B]

    plm = (jax.random.uniform(ks[10], (B, C)) < 0.3).astype(jnp.float32)
    plm = plm.at[jnp.arange(B), jax.random.randint(ks[11], (B,), 0, C)].set(1.0)
    pseudo_label_mix = plm / jnp.sum(plm, axis=1, keepdims=True)

    # ---- first step (feat_mean is None) ----
    loss, new_fm, new_conf = corr_loss_records_mixup(
        output_w, output_s, output_w_mix, output_s_mix, feat_w, feat_s,
        fc_weight, fc_bias, index, pseudo_label_mix,
        confidence, init_confidence, feat_mean=None, m=0.9, mixup=0.5)
    jax.block_until_ready((loss, new_fm, new_conf))

    ref_loss, ref_fm, ref_conf = _reference(
        output_w, output_s, output_w_mix, output_s_mix, feat_w, feat_s,
        fc_weight, fc_bias, index, pseudo_label_mix,
        confidence, init_confidence, None, 0.9, 0.5)

    assert jnp.allclose(loss, ref_loss, rtol=1e-4, atol=1e-4), (loss, ref_loss)
    assert jnp.allclose(new_fm, ref_fm, rtol=1e-4, atol=1e-4)
    assert jnp.allclose(new_conf, ref_conf, rtol=1e-4, atol=1e-4)

    # ---- second step (feat_mean not None: exercises the EMA coefficient path) ----
    loss2, new_fm2, new_conf2 = corr_loss_records_mixup(
        output_w, output_s, output_w_mix, output_s_mix, feat_w, feat_s,
        fc_weight, fc_bias, index, pseudo_label_mix,
        new_conf, init_confidence, feat_mean=new_fm, m=0.9, mixup=0.5)
    jax.block_until_ready((loss2, new_fm2, new_conf2))

    ref_loss2, ref_fm2, ref_conf2 = _reference(
        output_w, output_s, output_w_mix, output_s_mix, feat_w, feat_s,
        fc_weight, fc_bias, index, pseudo_label_mix,
        new_conf, init_confidence, new_fm, 0.9, 0.5)

    assert jnp.allclose(loss2, ref_loss2, rtol=1e-4, atol=1e-4), (loss2, ref_loss2)
    assert jnp.allclose(new_fm2, ref_fm2, rtol=1e-4, atol=1e-4)
    assert jnp.allclose(new_conf2, ref_conf2, rtol=1e-4, atol=1e-4)

    print("KERNEL_OK")
</pallas_src>

<mosaic_0001>
module attributes {stable_mosaic.version = 11 : i64} {
  func.func @_corr_loss_kernel(%arg0: memref<3xf32, #tpu.memory_space<smem>>, %arg1: memref<8xi32, #tpu.memory_space<smem>>, %arg2: memref<8x16xf32, #tpu.memory_space<vmem>>, %arg3: memref<8x16xf32, #tpu.memory_space<vmem>>, %arg4: memref<8x16xf32, #tpu.memory_space<vmem>>, %arg5: memref<8x16xf32, #tpu.memory_space<vmem>>, %arg6: memref<8x16xf32, #tpu.memory_space<vmem>>, %arg7: memref<8x32xf32, #tpu.memory_space<vmem>>, %arg8: memref<8x32xf32, #tpu.memory_space<vmem>>, %arg9: memref<1x32xf32, #tpu.memory_space<vmem>>, %arg10: memref<16x32xf32, #tpu.memory_space<vmem>>, %arg11: memref<1x16xf32, #tpu.memory_space<vmem>>, %arg12: memref<64x16xf32, #tpu.memory_space<any>>, %arg13: memref<64x16xf32, #tpu.memory_space<any>>, %arg14: memref<1x1xf32, #tpu.memory_space<smem>>, %arg15: memref<1x32xf32, #tpu.memory_space<vmem>>, %arg16: memref<64x16xf32, #tpu.memory_space<any>>, %arg17: memref<8x16xf32, #tpu.memory_space<vmem>>, %arg18: memref<8x16xf32, #tpu.memory_space<vmem>>, %arg19: memref<8x16xf32, #tpu.memory_space<vmem>>, %arg20: memref<2x!tpu.dma_semaphore, #tpu.memory_space<semaphore_mem>>) attributes {dimension_semantics = [], scalar_prefetch = 0 : i64, scratch_operands = 4 : i64, tpu.core_type = #tpu.core_type<tc>} {
    %c0 = arith.constant 0 : index
    %0 = memref.load %arg0[%c0] : memref<3xf32, #tpu.memory_space<smem>>
    %c1 = arith.constant 1 : index
    %1 = memref.load %arg0[%c1] : memref<3xf32, #tpu.memory_space<smem>>
    %c2 = arith.constant 2 : index
    %2 = memref.load %arg0[%c2] : memref<3xf32, #tpu.memory_space<smem>>
    %c0_0 = arith.constant 0 : index
    %3 = memref.load %arg1[%c0_0] : memref<8xi32, #tpu.memory_space<smem>>
    %c0_i32 = arith.constant 0 : i32
    %c0_i32_1 = arith.constant 0 : i32
    %4 = tpu.memref_slice %arg12[%3, %c0_i32_1] : memref<64x16xf32, #tpu.memory_space<any>> -> memref<1x16xf32, #tpu.memory_space<any>>
    %c0_i32_2 = arith.constant 0 : i32
    %c0_i32_3 = arith.constant 0 : i32
    %5 = tpu.memref_slice %arg17[%c0_i32_2, %c0_i32_3] : memref<8x16xf32, #tpu.memory_space<vmem>> -> memref<1x16xf32, #tpu.memory_space<vmem>>
    %6 = tpu.memref_slice %arg20[%c0_i32] : memref<2x!tpu.dma_semaphore, #tpu.memory_space<semaphore_mem>> -> memref<1x!tpu.dma_semaphore, #tpu.memory_space<semaphore_mem>>
    %7 = tpu.memref_squeeze %6 : memref<1x!tpu.dma_semaphore, #tpu.memory_space<semaphore_mem>> -> memref<!tpu.dma_semaphore, #tpu.memory_space<semaphore_mem>>
    tpu.enqueue_dma source(%4 : memref<1x16xf32, #tpu.memory_space<any>>) target(%5 : memref<1x16xf32, #tpu.memory_space<vmem>>) target_semaphore(%7 : memref<!tpu.dma_semaphore, #tpu.memory_space<semaphore_mem>>)
    %c0_i32_4 = arith.constant 0 : i32
    %c0_i32_5 = arith.constant 0 : i32
    %8 = tpu.memref_slice %arg13[%3, %c0_i32_5] : memref<64x16xf32, #tpu.memory_space<any>> -> memref<1x16xf32, #tpu.memory_space<any>>
    %c0_i32_6 = arith.constant 0 : i32
    %c0_i32_7 = arith.constant 0 : i32
    %9 = tpu.memref_slice %arg18[%c0_i32_6, %c0_i32_7] : memref<8x16xf32, #tpu.memory_space<vmem>> -> memref<1x16xf32, #tpu.memory_space<vmem>>
    %10 = tpu.memref_slice %arg20[%c0_i32_4] : memref<2x!tpu.dma_semaphore, #tpu.memory_space<semaphore_mem>> -> memref<1x!tpu.dma_semaphore, #tpu.memory_space<semaphore_mem>>
    %11 = tpu.memref_squeeze %10 : memref<1x!tpu.dma_semaphore, #tpu.memory_space<semaphore_mem>> -> memref<!tpu.dma_semaphore, #tpu.memory_space<semaphore_mem>>
    tpu.enqueue_dma source(%8 : memref<1x16xf32, #tpu.memory_space<any>>) target(%9 : memref<1x16xf32, #tpu.memory_space<vmem>>) target_semaphore(%11 : memref<!tpu.dma_semaphore, #tpu.memory_space<semaphore_mem>>)
    %c1_8 = arith.constant 1 : index
    %12 = memref.load %arg1[%c1_8] : memref<8xi32, #tpu.memory_space<smem>>
    %c0_i32_9 = arith.constant 0 : i32
    %c0_i32_10 = arith.constant 0 : i32
    %13 = tpu.memref_slice %arg12[%12, %c0_i32_10] : memref<64x16xf32, #tpu.memory_space<any>> -> memref<1x16xf32, #tpu.memory_space<any>>
    %c1_i32 = arith.constant 1 : i32
    %c0_i32_11 = arith.constant 0 : i32
    %14 = tpu.memref_slice %arg17[%c1_i32, %c0_i32_11] : memref<8x16xf32, #tpu.memory_space<vmem>> -> memref<1x16xf32, #tpu.memory_space<vmem>>
    %15 = tpu.memref_slice %arg20[%c0_i32_9] : memref<2x!tpu.dma_semaphore, #tpu.memory_space<semaphore_mem>> -> memref<1x!tpu.dma_semaphore, #tpu.memory_space<semaphore_mem>>
    %16 = tpu.memref_squeeze %15 : memref<1x!tpu.dma_semaphore, #tpu.memory_space<semaphore_mem>> -> memref<!tpu.dma_semaphore, #tpu.memory_space<semaphore_mem>>
    tpu.enqueue_dma source(%13 : memref<1x16xf32, #tpu.memory_space<any>>) target(%14 : memref<1x16xf32, #tpu.memory_space<vmem>>) target_semaphore(%16 : memref<!tpu.dma_semaphore, #tpu.memory_space<semaphore_mem>>)
    %c0_i32_12 = arith.constant 0 : i32
    %c0_i32_13 = arith.constant 0 : i32
    %17 = tpu.memref_slice %arg13[%12, %c0_i32_13] : memref<64x16xf32, #tpu.memory_space<any>> -> memref<1x16xf32, #tpu.memory_space<any>>
    %c1_i32_14 = arith.constant 1 : i32
    %c0_i32_15 = arith.constant 0 : i32
    %18 = tpu.memref_slice %arg18[%c1_i32_14, %c0_i32_15] : memref<8x16xf32, #tpu.memory_space<vmem>> -> memref<1x16xf32, #tpu.memory_space<vmem>>
    %19 = tpu.memref_slice %arg20[%c0_i32_12] : memref<2x!tpu.dma_semaphore, #tpu.memory_space<semaphore_mem>> -> memref<1x!tpu.dma_semaphore, #tpu.memory_space<semaphore_mem>>
    %20 = tpu.memref_squeeze %19 : memref<1x!tpu.dma_semaphore, #tpu.memory_space<semaphore_mem>> -> memref<!tpu.dma_semaphore, #tpu.memory_space<semaphore_mem>>
    tpu.enqueue_dma source(%17 : memref<1x16xf32, #tpu.memory_space<any>>) target(%18 : memref<1x16xf32, #tpu.memory_space<vmem>>) target_semaphore(%20 : memref<!tpu.dma_semaphore, #tpu.memory_space<semaphore_mem>>)
    %c2_16 = arith.constant 2 : index
    %21 = memref.load %arg1[%c2_16] : memref<8xi32, #tpu.memory_space<smem>>
    %c0_i32_17 = arith.constant 0 : i32
    %c0_i32_18 = arith.constant 0 : i32
    %22 = tpu.memref_slice %arg12[%21, %c0_i32_18] : memref<64x16xf32, #tpu.memory_space<any>> -> memref<1x16xf32, #tpu.memory_space<any>>
    %c2_i32 = arith.constant 2 : i32
    %c0_i32_19 = arith.constant 0 : i32
    %23 = tpu.memref_slice %arg17[%c2_i32, %c0_i32_19] : memref<8x16xf32, #tpu.memory_space<vmem>> -> memref<1x16xf32, #tpu.memory_space<vmem>>
    %24 = tpu.memref_slice %arg20[%c0_i32_17] : memref<2x!tpu.dma_semaphore, #tpu.memory_space<semaphore_mem>> -> memref<1x!tpu.dma_semaphore, #tpu.memory_space<semaphore_mem>>
    %25 = tpu.memref_squeeze %24 : memref<1x!tpu.dma_semaphore, #tpu.memory_space<semaphore_mem>> -> memref<!tpu.dma_semaphore, #tpu.memory_space<semaphore_mem>>
    tpu.enqueue_dma source(%22 : memref<1x16xf32, #tpu.memory_space<any>>) target(%23 : memref<1x16xf32, #tpu.memory_space<vmem>>) target_semaphore(%25 : memref<!tpu.dma_semaphore, #tpu.memory_space<semaphore_mem>>)
    %c0_i32_20 = arith.constant 0 : i32
    %c0_i32_21 = arith.constant 0 : i32
    %26 = tpu.memref_slice %arg13[%21, %c0_i32_21] : memref<64x16xf32, #tpu.memory_space<any>> -> memref<1x16xf32, #tpu.memory_space<any>>
    %c2_i32_22 = arith.constant 2 : i32
    %c0_i32_23 = arith.constant 0 : i32
    %27 = tpu.memref_slice %arg18[%c2_i32_22, %c0_i32_23] : memref<8x16xf32, #tpu.memory_space<vmem>> -> memref<1x16xf32, #tpu.memory_space<vmem>>
    %28 = tpu.memref_slice %arg20[%c0_i32_20] : memref<2x!tpu.dma_semaphore, #tpu.memory_space<semaphore_mem>> -> memref<1x!tpu.dma_semaphore, #tpu.memory_space<semaphore_mem>>
    %29 = tpu.memref_squeeze %28 : memref<1x!tpu.dma_semaphore, #tpu.memory_space<semaphore_mem>> -> memref<!tpu.dma_semaphore, #tpu.memory_space<semaphore_mem>>
    tpu.enqueue_dma source(%26 : memref<1x16xf32, #tpu.memory_space<any>>) target(%27 : memref<1x16xf32, #tpu.memory_space<vmem>>) target_semaphore(%29 : memref<!tpu.dma_semaphore, #tpu.memory_space<semaphore_mem>>)
    %c3 = arith.constant 3 : index
    %30 = memref.load %arg1[%c3] : memref<8xi32, #tpu.memory_space<smem>>
    %c0_i32_24 = arith.constant 0 : i32
    %c0_i32_25 = arith.constant 0 : i32
    %31 = tpu.memref_slice %arg12[%30, %c0_i32_25] : memref<64x16xf32, #tpu.memory_space<any>> -> memref<1x16xf32, #tpu.memory_space<any>>
    %c3_i32 = arith.constant 3 : i32
    %c0_i32_26 = arith.constant 0 : i32
    %32 = tpu.memref_slice %arg17[%c3_i32, %c0_i32_26] : memref<8x16xf32, #tpu.memory_space<vmem>> -> memref<1x16xf32, #tpu.memory_space<vmem>>
    %33 = tpu.memref_slice %arg20[%c0_i32_24] : memref<2x!tpu.dma_semaphore, #tpu.memory_space<semaphore_mem>> -> memref<1x!tpu.dma_semaphore, #tpu.memory_space<semaphore_mem>>
    %34 = tpu.memref_squeeze %33 : memref<1x!tpu.dma_semaphore, #tpu.memory_space<semaphore_mem>> -> memref<!tpu.dma_semaphore, #tpu.memory_space<semaphore_mem>>
    tpu.enqueue_dma source(%31 : memref<1x16xf32, #tpu.memory_space<any>>) target(%32 : memref<1x16xf32, #tpu.memory_space<vmem>>) target_semaphore(%34 : memref<!tpu.dma_semaphore, #tpu.memory_space<semaphore_mem>>)
    %c0_i32_27 = arith.constant 0 : i32
    %c0_i32_28 = arith.constant 0 : i32
    %35 = tpu.memref_slice %arg13[%30, %c0_i32_28] : memref<64x16xf32, #tpu.memory_space<any>> -> memref<1x16xf32, #tpu.memory_space<any>>
    %c3_i32_29 = arith.constant 3 : i32
    %c0_i32_30 = arith.constant 0 : i32
    %36 = tpu.memref_slice %arg18[%c3_i32_29, %c0_i32_30] : memref<8x16xf32, #tpu.memory_space<vmem>> -> memref<1x16xf32, #tpu.memory_space<vmem>>
    %37 = tpu.memref_slice %arg20[%c0_i32_27] : memref<2x!tpu.dma_semaphore, #tpu.memory_space<semaphore_mem>> -> memref<1x!tpu.dma_semaphore, #tpu.memory_space<semaphore_mem>>
    %38 = tpu.memref_squeeze %37 : memref<1x!tpu.dma_semaphore, #tpu.memory_space<semaphore_mem>> -> memref<!tpu.dma_semaphore, #tpu.memory_space<semaphore_mem>>
    tpu.enqueue_dma source(%35 : memref<1x16xf32, #tpu.memory_space<any>>) target(%36 : memref<1x16xf32, #tpu.memory_space<vmem>>) target_semaphore(%38 : memref<!tpu.dma_semaphore, #tpu.memory_space<semaphore_mem>>)
    %c4 = arith.constant 4 : index
    %39 = memref.load %arg1[%c4] : memref<8xi32, #tpu.memory_space<smem>>
    %c0_i32_31 = arith.constant 0 : i32
    %c0_i32_32 = arith.constant 0 : i32
    %40 = tpu.memref_slice %arg12[%39, %c0_i32_32] : memref<64x16xf32, #tpu.memory_space<any>> -> memref<1x16xf32, #tpu.memory_space<any>>
    %c4_i32 = arith.constant 4 : i32
    %c0_i32_33 = arith.constant 0 : i32
    %41 = tpu.memref_slice %arg17[%c4_i32, %c0_i32_33] : memref<8x16xf32, #tpu.memory_space<vmem>> -> memref<1x16xf32, #tpu.memory_space<vmem>>
    %42 = tpu.memref_slice %arg20[%c0_i32_31] : memref<2x!tpu.dma_semaphore, #tpu.memory_space<semaphore_mem>> -> memref<1x!tpu.dma_semaphore, #tpu.memory_space<semaphore_mem>>
    %43 = tpu.memref_squeeze %42 : memref<1x!tpu.dma_semaphore, #tpu.memory_space<semaphore_mem>> -> memref<!tpu.dma_semaphore, #tpu.memory_space<semaphore_mem>>
    tpu.enqueue_dma source(%40 : memref<1x16xf32, #tpu.memory_space<any>>) target(%41 : memref<1x16xf32, #tpu.memory_space<vmem>>) target_semaphore(%43 : memref<!tpu.dma_semaphore, #tpu.memory_space<semaphore_mem>>)
    %c0_i32_34 = arith.constant 0 : i32
    %c0_i32_35 = arith.constant 0 : i32
    %44 = tpu.memref_slice %arg13[%39, %c0_i32_35] : memref<64x16xf32, #tpu.memory_space<any>> -> memref<1x16xf32, #tpu.memory_space<any>>
    %c4_i32_36 = arith.constant 4 : i32
    %c0_i32_37 = arith.constant 0 : i32
    %45 = tpu.memref_slice %arg18[%c4_i32_36, %c0_i32_37] : memref<8x16xf32, #tpu.memory_space<vmem>> -> memref<1x16xf32, #tpu.memory_space<vmem>>
    %46 = tpu.memref_slice %arg20[%c0_i32_34] : memref<2x!tpu.dma_semaphore, #tpu.memory_space<semaphore_mem>> -> memref<1x!tpu.dma_semaphore, #tpu.memory_space<semaphore_mem>>
    %47 = tpu.memref_squeeze %46 : memref<1x!tpu.dma_semaphore, #tpu.memory_space<semaphore_mem>> -> memref<!tpu.dma_semaphore, #tpu.memory_space<semaphore_mem>>
    tpu.enqueue_dma source(%44 : memref<1x16xf32, #tpu.memory_space<any>>) target(%45 : memref<1x16xf32, #tpu.memory_space<vmem>>) target_semaphore(%47 : memref<!tpu.dma_semaphore, #tpu.memory_space<semaphore_mem>>)
    %c5 = arith.constant 5 : index
    %48 = memref.load %arg1[%c5] : memref<8xi32, #tpu.memory_space<smem>>
    %c0_i32_38 = arith.constant 0 : i32
    %c0_i32_39 = arith.constant 0 : i32
    %49 = tpu.memref_slice %arg12[%48, %c0_i32_39] : memref<64x16xf32, #tpu.memory_space<any>> -> memref<1x16xf32, #tpu.memory_space<any>>
    %c5_i32 = arith.constant 5 : i32
    %c0_i32_40 = arith.constant 0 : i32
    %50 = tpu.memref_slice %arg17[%c5_i32, %c0_i32_40] : memref<8x16xf32, #tpu.memory_space<vmem>> -> memref<1x16xf32, #tpu.memory_space<vmem>>
    %51 = tpu.memref_slice %arg20[%c0_i32_38] : memref<2x!tpu.dma_semaphore, #tpu.memory_space<semaphore_mem>> -> memref<1x!tpu.dma_semaphore, #tpu.memory_space<semaphore_mem>>
    %52 = tpu.memref_squeeze %51 : memref<1x!tpu.dma_semaphore, #tpu.memory_space<semaphore_mem>> -> memref<!tpu.dma_semaphore, #tpu.memory_space<semaphore_mem>>
    tpu.enqueue_dma source(%49 : memref<1x16xf32, #tpu.memory_space<any>>) target(%50 : memref<1x16xf32, #tpu.memory_space<vmem>>) target_semaphore(%52 : memref<!tpu.dma_semaphore, #tpu.memory_space<semaphore_mem>>)
    %c0_i32_41 = arith.constant 0 : i32
    %c0_i32_42 = arith.constant 0 : i32
    %53 = tpu.memref_slice %arg13[%48, %c0_i32_42] : memref<64x16xf32, #tpu.memory_space<any>> -> memref<1x16xf32, #tpu.memory_space<any>>
    %c5_i32_43 = arith.constant 5 : i32
    %c0_i32_44 = arith.constant 0 : i32
    %54 = tpu.memref_slice %arg18[%c5_i32_43, %c0_i32_44] : memref<8x16xf32, #tpu.memory_space<vmem>> -> memref<1x16xf32, #tpu.memory_space<vmem>>
    %55 = tpu.memref_slice %arg20[%c0_i32_41] : memref<2x!tpu.dma_semaphore, #tpu.memory_space<semaphore_mem>> -> memref<1x!tpu.dma_semaphore, #tpu.memory_space<semaphore_mem>>
    %56 = tpu.memref_squeeze %55 : memref<1x!tpu.dma_semaphore, #tpu.memory_space<semaphore_mem>> -> memref<!tpu.dma_semaphore, #tpu.memory_space<semaphore_mem>>
    tpu.enqueue_dma source(%53 : memref<1x16xf32, #tpu.memory_space<any>>) target(%54 : memref<1x16xf32, #tpu.memory_space<vmem>>) target_semaphore(%56 : memref<!tpu.dma_semaphore, #tpu.memory_space<semaphore_mem>>)
    %c6 = arith.constant 6 : index
    %57 = memref.load %arg1[%c6] : memref<8xi32, #tpu.memory_space<smem>>
    %c0_i32_45 = arith.constant 0 : i32
    %c0_i32_46 = arith.constant 0 : i32
    %58 = tpu.memref_slice %arg12[%57, %c0_i32_46] : memref<64x16xf32, #tpu.memory_space<any>> -> memref<1x16xf32, #tpu.memory_space<any>>
    %c6_i32 = arith.constant 6 : i32
    %c0_i32_47 = arith.constant 0 : i32
    %59 = tpu.memref_slice %arg17[%c6_i32, %c0_i32_47] : memref<8x16xf32, #tpu.memory_space<vmem>> -> memref<1x16xf32, #tpu.memory_space<vmem>>
    %60 = tpu.memref_slice %arg20[%c0_i32_45] : memref<2x!tpu.dma_semaphore, #tpu.memory_space<semaphore_mem>> -> memref<1x!tpu.dma_semaphore, #tpu.memory_space<semaphore_mem>>
    %61 = tpu.memref_squeeze %60 : memref<1x!tpu.dma_semaphore, #tpu.memory_space<semaphore_mem>> -> memref<!tpu.dma_semaphore, #tpu.memory_space<semaphore_mem>>
    tpu.enqueue_dma source(%58 : memref<1x16xf32, #tpu.memory_space<any>>) target(%59 : memref<1x16xf32, #tpu.memory_space<vmem>>) target_semaphore(%61 : memref<!tpu.dma_semaphore, #tpu.memory_space<semaphore_mem>>)
    %c0_i32_48 = arith.constant 0 : i32
    %c0_i32_49 = arith.constant 0 : i32
    %62 = tpu.memref_slice %arg13[%57, %c0_i32_49] : memref<64x16xf32, #tpu.memory_space<any>> -> memref<1x16xf32, #tpu.memory_space<any>>
    %c6_i32_50 = arith.constant 6 : i32
    %c0_i32_51 = arith.constant 0 : i32
    %63 = tpu.memref_slice %arg18[%c6_i32_50, %c0_i32_51] : memref<8x16xf32, #tpu.memory_space<vmem>> -> memref<1x16xf32, #tpu.memory_space<vmem>>
    %64 = tpu.memref_slice %arg20[%c0_i32_48] : memref<2x!tpu.dma_semaphore, #tpu.memory_space<semaphore_mem>> -> memref<1x!tpu.dma_semaphore, #tpu.memory_space<semaphore_mem>>
    %65 = tpu.memref_squeeze %64 : memref<1x!tpu.dma_semaphore, #tpu.memory_space<semaphore_mem>> -> memref<!tpu.dma_semaphore, #tpu.memory_space<semaphore_mem>>
    tpu.enqueue_dma source(%62 : memref<1x16xf32, #tpu.memory_space<any>>) target(%63 : memref<1x16xf32, #tpu.memory_space<vmem>>) target_semaphore(%65 : memref<!tpu.dma_semaphore, #tpu.memory_space<semaphore_mem>>)
    %c7 = arith.constant 7 : index
    %66 = memref.load %arg1[%c7] : memref<8xi32, #tpu.memory_space<smem>>
    %c0_i32_52 = arith.constant 0 : i32
    %c0_i32_53 = arith.constant 0 : i32
    %67 = tpu.memref_slice %arg12[%66, %c0_i32_53] : memref<64x16xf32, #tpu.memory_space<any>> -> memref<1x16xf32, #tpu.memory_space<any>>
    %c7_i32 = arith.constant 7 : i32
    %c0_i32_54 = arith.constant 0 : i32
    %68 = tpu.memref_slice %arg17[%c7_i32, %c0_i32_54] : memref<8x16xf32, #tpu.memory_space<vmem>> -> memref<1x16xf32, #tpu.memory_space<vmem>>
    %69 = tpu.memref_slice %arg20[%c0_i32_52] : memref<2x!tpu.dma_semaphore, #tpu.memory_space<semaphore_mem>> -> memref<1x!tpu.dma_semaphore, #tpu.memory_space<semaphore_mem>>
    %70 = tpu.memref_squeeze %69 : memref<1x!tpu.dma_semaphore, #tpu.memory_space<semaphore_mem>> -> memref<!tpu.dma_semaphore, #tpu.memory_space<semaphore_mem>>
    tpu.enqueue_dma source(%67 : memref<1x16xf32, #tpu.memory_space<any>>) target(%68 : memref<1x16xf32, #tpu.memory_space<vmem>>) target_semaphore(%70 : memref<!tpu.dma_semaphore, #tpu.memory_space<semaphore_mem>>)
    %c0_i32_55 = arith.constant 0 : i32
    %c0_i32_56 = arith.constant 0 : i32
    %71 = tpu.memref_slice %arg13[%66, %c0_i32_56] : memref<64x16xf32, #tpu.memory_space<any>> -> memref<1x16xf32, #tpu.memory_space<any>>
    %c7_i32_57 = arith.constant 7 : i32
    %c0_i32_58 = arith.constant 0 : i32
    %72 = tpu.memref_slice %arg18[%c7_i32_57, %c0_i32_58] : memref<8x16xf32, #tpu.memory_space<vmem>> -> memref<1x16xf32, #tpu.memory_space<vmem>>
    %73 = tpu.memref_slice %arg20[%c0_i32_55] : memref<2x!tpu.dma_semaphore, #tpu.memory_space<semaphore_mem>> -> memref<1x!tpu.dma_semaphore, #tpu.memory_space<semaphore_mem>>
    %74 = tpu.memref_squeeze %73 : memref<1x!tpu.dma_semaphore, #tpu.memory_space<semaphore_mem>> -> memref<!tpu.dma_semaphore, #tpu.memory_space<semaphore_mem>>
    tpu.enqueue_dma source(%71 : memref<1x16xf32, #tpu.memory_space<any>>) target(%72 : memref<1x16xf32, #tpu.memory_space<vmem>>) target_semaphore(%74 : memref<!tpu.dma_semaphore, #tpu.memory_space<semaphore_mem>>)
    %c0_i32_59 = arith.constant 0 : i32
    %c0_i32_60 = arith.constant 0 : i32
    %c0_i32_61 = arith.constant 0 : i32
    %75 = tpu.memref_slice %arg12[%c0_i32_60, %c0_i32_61] : memref<64x16xf32, #tpu.memory_space<any>> -> memref<1x16xf32, #tpu.memory_space<any>>
    %c0_i32_62 = arith.constant 0 : i32
    %c0_i32_63 = arith.constant 0 : i32
    %76 = tpu.memref_slice %arg17[%c0_i32_62, %c0_i32_63] : memref<8x16xf32, #tpu.memory_space<vmem>> -> memref<1x16xf32, #tpu.memory_space<vmem>>
    %77 = tpu.memref_slice %arg20[%c0_i32_59] : memref<2x!tpu.dma_semaphore, #tpu.memory_space<semaphore_mem>> -> memref<1x!tpu.dma_semaphore, #tpu.memory_space<semaphore_mem>>
    %78 = tpu.memref_squeeze %77 : memref<1x!tpu.dma_semaphore, #tpu.memory_space<semaphore_mem>> -> memref<!tpu.dma_semaphore, #tpu.memory_space<semaphore_mem>>
    tpu.wait_dma2 semaphore(%78 : memref<!tpu.dma_semaphore, #tpu.memory_space<semaphore_mem>>) src(%75 : memref<1x16xf32, #tpu.memory_space<any>>) dst(%76 : memref<1x16xf32, #tpu.memory_space<vmem>>)
    %c0_i32_64 = arith.constant 0 : i32
    %c0_i32_65 = arith.constant 0 : i32
    %c0_i32_66 = arith.constant 0 : i32
    %79 = tpu.memref_slice %arg13[%c0_i32_65, %c0_i32_66] : memref<64x16xf32, #tpu.memory_space<any>> -> memref<1x16xf32, #tpu.memory_space<any>>
    %c0_i32_67 = arith.constant 0 : i32
    %c0_i32_68 = arith.constant 0 : i32
    %80 = tpu.memref_slice %arg18[%c0_i32_67, %c0_i32_68] : memref<8x16xf32, #tpu.memory_space<vmem>> -> memref<1x16xf32, #tpu.memory_space<vmem>>
    %81 = tpu.memref_slice %arg20[%c0_i32_64] : memref<2x!tpu.dma_semaphore, #tpu.memory_space<semaphore_mem>> -> memref<1x!tpu.dma_semaphore, #tpu.memory_space<semaphore_mem>>
    %82 = tpu.memref_squeeze %81 : memref<1x!tpu.dma_semaphore, #tpu.memory_space<semaphore_mem>> -> memref<!tpu.dma_semaphore, #tpu.memory_space<semaphore_mem>>
    tpu.wait_dma2 semaphore(%82 : memref<!tpu.dma_semaphore, #tpu.memory_space<semaphore_mem>>) src(%79 : memref<1x16xf32, #tpu.memory_space<any>>) dst(%80 : memref<1x16xf32, #tpu.memory_space<vmem>>)
    %c0_i32_69 = arith.constant 0 : i32
    %c0_i32_70 = arith.constant 0 : i32
    %c0_i32_71 = arith.constant 0 : i32
    %83 = tpu.memref_slice %arg12[%c0_i32_70, %c0_i32_71] : memref<64x16xf32, #tpu.memory_space<any>> -> memref<1x16xf32, #tpu.memory_space<any>>
    %c1_i32_72 = arith.constant 1 : i32
    %c0_i32_73 = arith.constant 0 : i32
    %84 = tpu.memref_slice %arg17[%c1_i32_72, %c0_i32_73] : memref<8x16xf32, #tpu.memory_space<vmem>> -> memref<1x16xf32, #tpu.memory_space<vmem>>
    %85 = tpu.memref_slice %arg20[%c0_i32_69] : memref<2x!tpu.dma_semaphore, #tpu.memory_space<semaphore_mem>> -> memref<1x!tpu.dma_semaphore, #tpu.memory_space<semaphore_mem>>
    %86 = tpu.memref_squeeze %85 : memref<1x!tpu.dma_semaphore, #tpu.memory_space<semaphore_mem>> -> memref<!tpu.dma_semaphore, #tpu.memory_space<semaphore_mem>>
    tpu.wait_dma2 semaphore(%86 : memref<!tpu.dma_semaphore, #tpu.memory_space<semaphore_mem>>) src(%83 : memref<1x16xf32, #tpu.memory_space<any>>) dst(%84 : memref<1x16xf32, #tpu.memory_space<vmem>>)
    %c0_i32_74 = arith.constant 0 : i32
    %c0_i32_75 = arith.constant 0 : i32
    %c0_i32_76 = arith.constant 0 : i32
    %87 = tpu.memref_slice %arg13[%c0_i32_75, %c0_i32_76] : memref<64x16xf32, #tpu.memory_space<any>> -> memref<1x16xf32, #tpu.memory_space<any>>
    %c1_i32_77 = arith.constant 1 : i32
    %c0_i32_78 = arith.constant 0 : i32
    %88 = tpu.memref_slice %arg18[%c1_i32_77, %c0_i32_78] : memref<8x16xf32, #tpu.memory_space<vmem>> -> memref<1x16xf32, #tpu.memory_space<vmem>>
    %89 = tpu.memref_slice %arg20[%c0_i32_74] : memref<2x!tpu.dma_semaphore, #tpu.memory_space<semaphore_mem>> -> memref<1x!tpu.dma_semaphore, #tpu.memory_space<semaphore_mem>>
    %90 = tpu.memref_squeeze %89 : memref<1x!tpu.dma_semaphore, #tpu.memory_space<semaphore_mem>> -> memref<!tpu.dma_semaphore, #tpu.memory_space<semaphore_mem>>
    tpu.wait_dma2 semaphore(%90 : memref<!tpu.dma_semaphore, #tpu.memory_space<semaphore_mem>>) src(%87 : memref<1x16xf32, #tpu.memory_space<any>>) dst(%88 : memref<1x16xf32, #tpu.memory_space<vmem>>)
    %c0_i32_79 = arith.constant 0 : i32
    %c0_i32_80 = arith.constant 0 : i32
    %c0_i32_81 = arith.constant 0 : i32
    %91 = tpu.memref_slice %arg12[%c0_i32_80, %c0_i32_81] : memref<64x16xf32, #tpu.memory_space<any>> -> memref<1x16xf32, #tpu.memory_space<any>>
    %c2_i32_82 = arith.constant 2 : i32
    %c0_i32_83 = arith.constant 0 : i32
    %92 = tpu.memref_slice %arg17[%c2_i32_82, %c0_i32_83] : memref<8x16xf32, #tpu.memory_space<vmem>> -> memref<1x16xf32, #tpu.memory_space<vmem>>
    %93 = tpu.memref_slice %arg20[%c0_i32_79] : memref<2x!tpu.dma_semaphore, #tpu.memory_space<semaphore_mem>> -> memref<1x!tpu.dma_semaphore, #tpu.memory_space<semaphore_mem>>
    %94 = tpu.memref_squeeze %93 : memref<1x!tpu.dma_semaphore, #tpu.memory_space<semaphore_mem>> -> memref<!tpu.dma_semaphore, #tpu.memory_space<semaphore_mem>>
    tpu.wait_dma2 semaphore(%94 : memref<!tpu.dma_semaphore, #tpu.memory_space<semaphore_mem>>) src(%91 : memref<1x16xf32, #tpu.memory_space<any>>) dst(%92 : memref<1x16xf32, #tpu.memory_space<vmem>>)
    %c0_i32_84 = arith.constant 0 : i32
    %c0_i32_85 = arith.constant 0 : i32
    %c0_i32_86 = arith.constant 0 : i32
    %95 = tpu.memref_slice %arg13[%c0_i32_85, %c0_i32_86] : memref<64x16xf32, #tpu.memory_space<any>> -> memref<1x16xf32, #tpu.memory_space<any>>
    %c2_i32_87 = arith.constant 2 : i32
    %c0_i32_88 = arith.constant 0 : i32
    %96 = tpu.memref_slice %arg18[%c2_i32_87, %c0_i32_88] : memref<8x16xf32, #tpu.memory_space<vmem>> -> memref<1x16xf32, #tpu.memory_space<vmem>>
    %97 = tpu.memref_slice %arg20[%c0_i32_84] : memref<2x!tpu.dma_semaphore, #tpu.memory_space<semaphore_mem>> -> memref<1x!tpu.dma_semaphore, #tpu.memory_space<semaphore_mem>>
    %98 = tpu.memref_squeeze %97 : memref<1x!tpu.dma_semaphore, #tpu.memory_space<semaphore_mem>> -> memref<!tpu.dma_semaphore, #tpu.memory_space<semaphore_mem>>
    tpu.wait_dma2 semaphore(%98 : memref<!tpu.dma_semaphore, #tpu.memory_space<semaphore_mem>>) src(%95 : memref<1x16xf32, #tpu.memory_space<any>>) dst(%96 : memref<1x16xf32, #tpu.memory_space<vmem>>)
    %c0_i32_89 = arith.constant 0 : i32
    %c0_i32_90 = arith.constant 0 : i32
    %c0_i32_91 = arith.constant 0 : i32
    %99 = tpu.memref_slice %arg12[%c0_i32_90, %c0_i32_91] : memref<64x16xf32, #tpu.memory_space<any>> -> memref<1x16xf32, #tpu.memory_space<any>>
    %c3_i32_92 = arith.constant 3 : i32
    %c0_i32_93 = arith.constant 0 : i32
    %100 = tpu.memref_slice %arg17[%c3_i32_92, %c0_i32_93] : memref<8x16xf32, #tpu.memory_space<vmem>> -> memref<1x16xf32, #tpu.memory_space<vmem>>
    %101 = tpu.memref_slice %arg20[%c0_i32_89] : memref<2x!tpu.dma_semaphore, #tpu.memory_space<semaphore_mem>> -> memref<1x!tpu.dma_semaphore, #tpu.memory_space<semaphore_mem>>
    %102 = tpu.memref_squeeze %101 : memref<1x!tpu.dma_semaphore, #tpu.memory_space<semaphore_mem>> -> memref<!tpu.dma_semaphore, #tpu.memory_space<semaphore_mem>>
    tpu.wait_dma2 semaphore(%102 : memref<!tpu.dma_semaphore, #tpu.memory_space<semaphore_mem>>) src(%99 : memref<1x16xf32, #tpu.memory_space<any>>) dst(%100 : memref<1x16xf32, #tpu.memory_space<vmem>>)
    %c0_i32_94 = arith.constant 0 : i32
    %c0_i32_95 = arith.constant 0 : i32
    %c0_i32_96 = arith.constant 0 : i32
    %103 = tpu.memref_slice %arg13[%c0_i32_95, %c0_i32_96] : memref<64x16xf32, #tpu.memory_space<any>> -> memref<1x16xf32, #tpu.memory_space<any>>
    %c3_i32_97 = arith.constant 3 : i32
    %c0_i32_98 = arith.constant 0 : i32
    %104 = tpu.memref_slice %arg18[%c3_i32_97, %c0_i32_98] : memref<8x16xf32, #tpu.memory_space<vmem>> -> memref<1x16xf32, #tpu.memory_space<vmem>>
    %105 = tpu.memref_slice %arg20[%c0_i32_94] : memref<2x!tpu.dma_semaphore, #tpu.memory_space<semaphore_mem>> -> memref<1x!tpu.dma_semaphore, #tpu.memory_space<semaphore_mem>>
    %106 = tpu.memref_squeeze %105 : memref<1x!tpu.dma_semaphore, #tpu.memory_space<semaphore_mem>> -> memref<!tpu.dma_semaphore, #tpu.memory_space<semaphore_mem>>
    tpu.wait_dma2 semaphore(%106 : memref<!tpu.dma_semaphore, #tpu.memory_space<semaphore_mem>>) src(%103 : memref<1x16xf32, #tpu.memory_space<any>>) dst(%104 : memref<1x16xf32, #tpu.memory_space<vmem>>)
    %c0_i32_99 = arith.constant 0 : i32
    %c0_i32_100 = arith.constant 0 : i32
    %c0_i32_101 = arith.constant 0 : i32
    %107 = tpu.memref_slice %arg12[%c0_i32_100, %c0_i32_101] : memref<64x16xf32, #tpu.memory_space<any>> -> memref<1x16xf32, #tpu.memory_space<any>>
    %c4_i32_102 = arith.constant 4 : i32
    %c0_i32_103 = arith.constant 0 : i32
    %108 = tpu.memref_slice %arg17[%c4_i32_102, %c0_i32_103] : memref<8x16xf32, #tpu.memory_space<vmem>> -> memref<1x16xf32, #tpu.memory_space<vmem>>
    %109 = tpu.memref_slice %arg20[%c0_i32_99] : memref<2x!tpu.dma_semaphore, #tpu.memory_space<semaphore_mem>> -> memref<1x!tpu.dma_semaphore, #tpu.memory_space<semaphore_mem>>
    %110 = tpu.memref_squeeze %109 : memref<1x!tpu.dma_semaphore, #tpu.memory_space<semaphore_mem>> -> memref<!tpu.dma_semaphore, #tpu.memory_space<semaphore_mem>>
    tpu.wait_dma2 semaphore(%110 : memref<!tpu.dma_semaphore, #tpu.memory_space<semaphore_mem>>) src(%107 : memref<1x16xf32, #tpu.memory_space<any>>) dst(%108 : memref<1x16xf32, #tpu.memory_space<vmem>>)
    %c0_i32_104 = arith.constant 0 : i32
    %c0_i32_105 = arith.constant 0 : i32
    %c0_i32_106 = arith.constant 0 : i32
    %111 = tpu.memref_slice %arg13[%c0_i32_105, %c0_i32_106] : memref<64x16xf32, #tpu.memory_space<any>> -> memref<1x16xf32, #tpu.memory_space<any>>
    %c4_i32_107 = arith.constant 4 : i32
    %c0_i32_108 = arith.constant 0 : i32
    %112 = tpu.memref_slice %arg18[%c4_i32_107, %c0_i32_108] : memref<8x16xf32, #tpu.memory_space<vmem>> -> memref<1x16xf32, #tpu.memory_space<vmem>>
    %113 = tpu.memref_slice %arg20[%c0_i32_104] : memref<2x!tpu.dma_semaphore, #tpu.memory_space<semaphore_mem>> -> memref<1x!tpu.dma_semaphore, #tpu.memory_space<semaphore_mem>>
    %114 = tpu.memref_squeeze %113 : memref<1x!tpu.dma_semaphore, #tpu.memory_space<semaphore_mem>> -> memref<!tpu.dma_semaphore, #tpu.memory_space<semaphore_mem>>
    tpu.wait_dma2 semaphore(%114 : memref<!tpu.dma_semaphore, #tpu.memory_space<semaphore_mem>>) src(%111 : memref<1x16xf32, #tpu.memory_space<any>>) dst(%112 : memref<1x16xf32, #tpu.memory_space<vmem>>)
    %c0_i32_109 = arith.constant 0 : i32
    %c0_i32_110 = arith.constant 0 : i32
    %c0_i32_111 = arith.constant 0 : i32
    %115 = tpu.memref_slice %arg12[%c0_i32_110, %c0_i32_111] : memref<64x16xf32, #tpu.memory_space<any>> -> memref<1x16xf32, #tpu.memory_space<any>>
    %c5_i32_112 = arith.constant 5 : i32
    %c0_i32_113 = arith.constant 0 : i32
    %116 = tpu.memref_slice %arg17[%c5_i32_112, %c0_i32_113] : memref<8x16xf32, #tpu.memory_space<vmem>> -> memref<1x16xf32, #tpu.memory_space<vmem>>
    %117 = tpu.memref_slice %arg20[%c0_i32_109] : memref<2x!tpu.dma_semaphore, #tpu.memory_space<semaphore_mem>> -> memref<1x!tpu.dma_semaphore, #tpu.memory_space<semaphore_mem>>
    %118 = tpu.memref_squeeze %117 : memref<1x!tpu.dma_semaphore, #tpu.memory_space<semaphore_mem>> -> memref<!tpu.dma_semaphore, #tpu.memory_space<semaphore_mem>>
    tpu.wait_dma2 semaphore(%118 : memref<!tpu.dma_semaphore, #tpu.memory_space<semaphore_mem>>) src(%115 : memref<1x16xf32, #tpu.memory_space<any>>) dst(%116 : memref<1x16xf32, #tpu.memory_space<vmem>>)
    %c0_i32_114 = arith.constant 0 : i32
    %c0_i32_115 = arith.constant 0 : i32
    %c0_i32_116 = arith.constant 0 : i32
    %119 = tpu.memref_slice %arg13[%c0_i32_115, %c0_i32_116] : memref<64x16xf32, #tpu.memory_space<any>> -> memref<1x16xf32, #tpu.memory_space<any>>
    %c5_i32_117 = arith.constant 5 : i32
    %c0_i32_118 = arith.constant 0 : i32
    %120 = tpu.memref_slice %arg18[%c5_i32_117, %c0_i32_118] : memref<8x16xf32, #tpu.memory_space<vmem>> -> memref<1x16xf32, #tpu.memory_space<vmem>>
    %121 = tpu.memref_slice %arg20[%c0_i32_114] : memref<2x!tpu.dma_semaphore, #tpu.memory_space<semaphore_mem>> -> memref<1x!tpu.dma_semaphore, #tpu.memory_space<semaphore_mem>>
    %122 = tpu.memref_squeeze %121 : memref<1x!tpu.dma_semaphore, #tpu.memory_space<semaphore_mem>> -> memref<!tpu.dma_semaphore, #tpu.memory_space<semaphore_mem>>
    tpu.wait_dma2 semaphore(%122 : memref<!tpu.dma_semaphore, #tpu.memory_space<semaphore_mem>>) src(%119 : memref<1x16xf32, #tpu.memory_space<any>>) dst(%120 : memref<1x16xf32, #tpu.memory_space<vmem>>)
    %c0_i32_119 = arith.constant 0 : i32
    %c0_i32_120 = arith.constant 0 : i32
    %c0_i32_121 = arith.constant 0 : i32
    %123 = tpu.memref_slice %arg12[%c0_i32_120, %c0_i32_121] : memref<64x16xf32, #tpu.memory_space<any>> -> memref<1x16xf32, #tpu.memory_space<any>>
    %c6_i32_122 = arith.constant 6 : i32
    %c0_i32_123 = arith.constant 0 : i32
    %124 = tpu.memref_slice %arg17[%c6_i32_122, %c0_i32_123] : memref<8x16xf32, #tpu.memory_space<vmem>> -> memref<1x16xf32, #tpu.memory_space<vmem>>
    %125 = tpu.memref_slice %arg20[%c0_i32_119] : memref<2x!tpu.dma_semaphore, #tpu.memory_space<semaphore_mem>> -> memref<1x!tpu.dma_semaphore, #tpu.memory_space<semaphore_mem>>
    %126 = tpu.memref_squeeze %125 : memref<1x!tpu.dma_semaphore, #tpu.memory_space<semaphore_mem>> -> memref<!tpu.dma_semaphore, #tpu.memory_space<semaphore_mem>>
    tpu.wait_dma2 semaphore(%126 : memref<!tpu.dma_semaphore, #tpu.memory_space<semaphore_mem>>) src(%123 : memref<1x16xf32, #tpu.memory_space<any>>) dst(%124 : memref<1x16xf32, #tpu.memory_space<vmem>>)
    %c0_i32_124 = arith.constant 0 : i32
    %c0_i32_125 = arith.constant 0 : i32
    %c0_i32_126 = arith.constant 0 : i32
    %127 = tpu.memref_slice %arg13[%c0_i32_125, %c0_i32_126] : memref<64x16xf32, #tpu.memory_space<any>> -> memref<1x16xf32, #tpu.memory_space<any>>
    %c6_i32_127 = arith.constant 6 : i32
    %c0_i32_128 = arith.constant 0 : i32
    %128 = tpu.memref_slice %arg18[%c6_i32_127, %c0_i32_128] : memref<8x16xf32, #tpu.memory_space<vmem>> -> memref<1x16xf32, #tpu.memory_space<vmem>>
    %129 = tpu.memref_slice %arg20[%c0_i32_124] : memref<2x!tpu.dma_semaphore, #tpu.memory_space<semaphore_mem>> -> memref<1x!tpu.dma_semaphore, #tpu.memory_space<semaphore_mem>>
    %130 = tpu.memref_squeeze %129 : memref<1x!tpu.dma_semaphore, #tpu.memory_space<semaphore_mem>> -> memref<!tpu.dma_semaphore, #tpu.memory_space<semaphore_mem>>
    tpu.wait_dma2 semaphore(%130 : memref<!tpu.dma_semaphore, #tpu.memory_space<semaphore_mem>>) src(%127 : memref<1x16xf32, #tpu.memory_space<any>>) dst(%128 : memref<1x16xf32, #tpu.memory_space<vmem>>)
    %c0_i32_129 = arith.constant 0 : i32
    %c0_i32_130 = arith.constant 0 : i32
    %c0_i32_131 = arith.constant 0 : i32
    %131 = tpu.memref_slice %arg12[%c0_i32_130, %c0_i32_131] : memref<64x16xf32, #tpu.memory_space<any>> -> memref<1x16xf32, #tpu.memory_space<any>>
    %c7_i32_132 = arith.constant 7 : i32
    %c0_i32_133 = arith.constant 0 : i32
    %132 = tpu.memref_slice %arg17[%c7_i32_132, %c0_i32_133] : memref<8x16xf32, #tpu.memory_space<vmem>> -> memref<1x16xf32, #tpu.memory_space<vmem>>
    %133 = tpu.memref_slice %arg20[%c0_i32_129] : memref<2x!tpu.dma_semaphore, #tpu.memory_space<semaphore_mem>> -> memref<1x!tpu.dma_semaphore, #tpu.memory_space<semaphore_mem>>
    %134 = tpu.memref_squeeze %133 : memref<1x!tpu.dma_semaphore, #tpu.memory_space<semaphore_mem>> -> memref<!tpu.dma_semaphore, #tpu.memory_space<semaphore_mem>>
    tpu.wait_dma2 semaphore(%134 : memref<!tpu.dma_semaphore, #tpu.memory_space<semaphore_mem>>) src(%131 : memref<1x16xf32, #tpu.memory_space<any>>) dst(%132 : memref<1x16xf32, #tpu.memory_space<vmem>>)
    %c0_i32_134 = arith.constant 0 : i32
    %c0_i32_135 = arith.constant 0 : i32
    %c0_i32_136 = arith.constant 0 : i32
    %135 = tpu.memref_slice %arg13[%c0_i32_135, %c0_i32_136] : memref<64x16xf32, #tpu.memory_space<any>> -> memref<1x16xf32, #tpu.memory_space<any>>
    %c7_i32_137 = arith.constant 7 : i32
    %c0_i32_138 = arith.constant 0 : i32
    %136 = tpu.memref_slice %arg18[%c7_i32_137, %c0_i32_138] : memref<8x16xf32, #tpu.memory_space<vmem>> -> memref<1x16xf32, #tpu.memory_space<vmem>>
    %137 = tpu.memref_slice %arg20[%c0_i32_134] : memref<2x!tpu.dma_semaphore, #tpu.memory_space<semaphore_mem>> -> memref<1x!tpu.dma_semaphore, #tpu.memory_space<semaphore_mem>>
    %138 = tpu.memref_squeeze %137 : memref<1x!tpu.dma_semaphore, #tpu.memory_space<semaphore_mem>> -> memref<!tpu.dma_semaphore, #tpu.memory_space<semaphore_mem>>
    tpu.wait_dma2 semaphore(%138 : memref<!tpu.dma_semaphore, #tpu.memory_space<semaphore_mem>>) src(%135 : memref<1x16xf32, #tpu.memory_space<any>>) dst(%136 : memref<1x16xf32, #tpu.memory_space<vmem>>)
    %c0_139 = arith.constant 0 : index
    %c0_140 = arith.constant 0 : index
    %139 = vector.load %arg2[%c0_139, %c0_140] : memref<8x16xf32, #tpu.memory_space<vmem>>, vector<8x16xf32>
    %cst = arith.constant dense<0xFF800000> : vector<8xf32>
    %140 = vector.multi_reduction <maximumf>, %139, %cst [1] : vector<8x16xf32> to vector<8xf32>
    %141 = vector.shape_cast %140 : vector<8xf32> to vector<8x1xf32>
    %142 = vector.broadcast %141 : vector<8x1xf32> to vector<8x16xf32>
    %143 = arith.subf %139, %142 : vector<8x16xf32>
    %144 = math.exp %143 : vector<8x16xf32>
    %cst_141 = arith.constant dense<0.000000e+00> : vector<8xf32>
    %145 = vector.multi_reduction <add>, %144, %cst_141 [1] : vector<8x16xf32> to vector<8xf32>
    %146 = vector.shape_cast %145 : vector<8xf32> to vector<8x1xf32>
    %c0_142 = arith.constant 0 : index
    %c0_143 = arith.constant 0 : index
    %147 = vector.load %arg3[%c0_142, %c0_143] : memref<8x16xf32, #tpu.memory_space<vmem>>, vector<8x16xf32>
    %cst_144 = arith.constant dense<0xFF800000> : vector<8xf32>
    %148 = vector.multi_reduction <maximumf>, %147, %cst_144 [1] : vector<8x16xf32> to vector<8xf32>
    %149 = vector.shape_cast %148 : vector<8xf32> to vector<8x1xf32>
    %150 = vector.broadcast %149 : vector<8x1xf32> to vector<8x16xf32>
    %151 = arith.subf %147, %150 : vector<8x16xf32>
    %152 = math.exp %151 : vector<8x16xf32>
    %cst_145 = arith.constant dense<0.000000e+00> : vector<8xf32>
    %153 = vector.multi_reduction <add>, %152, %cst_145 [1] : vector<8x16xf32> to vector<8xf32>
    %154 = vector.shape_cast %153 : vector<8xf32> to vector<8x1xf32>
    %c0_146 = arith.constant 0 : index
    %c0_147 = arith.constant 0 : index
    %155 = vector.load %arg4[%c0_146, %c0_147] : memref<8x16xf32, #tpu.memory_space<vmem>>, vector<8x16xf32>
    %cst_148 = arith.constant dense<0xFF800000> : vector<8xf32>
    %156 = vector.multi_reduction <maximumf>, %155, %cst_148 [1] : vector<8x16xf32> to vector<8xf32>
    %157 = vector.shape_cast %156 : vector<8xf32> to vector<8x1xf32>
    %158 = vector.broadcast %157 : vector<8x1xf32> to vector<8x16xf32>
    %159 = arith.subf %155, %158 : vector<8x16xf32>
    %160 = math.exp %159 : vector<8x16xf32>
    %cst_149 = arith.constant dense<0.000000e+00> : vector<8xf32>
    %161 = vector.multi_reduction <add>, %160, %cst_149 [1] : vector<8x16xf32> to vector<8xf32>
    %162 = vector.shape_cast %161 : vector<8xf32> to vector<8x1xf32>
    %c0_150 = arith.constant 0 : index
    %c0_151 = arith.constant 0 : index
    %163 = vector.load %arg5[%c0_150, %c0_151] : memref<8x16xf32, #tpu.memory_space<vmem>>, vector<8x16xf32>
    %cst_152 = arith.constant dense<0xFF800000> : vector<8xf32>
    %164 = vector.multi_reduction <maximumf>, %163, %cst_152 [1] : vector<8x16xf32> to vector<8xf32>
    %165 = vector.shape_cast %164 : vector<8xf32> to vector<8x1xf32>
    %166 = vector.broadcast %165 : vector<8x1xf32> to vector<8x16xf32>
    %167 = arith.subf %163, %166 : vector<8x16xf32>
    %168 = math.exp %167 : vector<8x16xf32>
    %cst_153 = arith.constant dense<0.000000e+00> : vector<8xf32>
    %169 = vector.multi_reduction <add>, %168, %cst_153 [1] : vector<8x16xf32> to vector<8xf32>
    %170 = vector.shape_cast %169 : vector<8xf32> to vector<8x1xf32>
    %c0_154 = arith.constant 0 : index
    %c0_155 = arith.constant 0 : index
    %171 = vector.load %arg17[%c0_154, %c0_155] : memref<8x16xf32, #tpu.memory_space<vmem>>, vector<8x16xf32>
    %c0_156 = arith.constant 0 : index
    %c0_157 = arith.constant 0 : index
    %172 = vector.load %arg6[%c0_156, %c0_157] : memref<8x16xf32, #tpu.memory_space<vmem>>, vector<8x16xf32>
    %173 = tpu.reciprocal %146 {approx = true} : vector<8x1xf32> -> vector<8x1xf32>
    %174 = arith.mulf %146, %173 : vector<8x1xf32>
    %cst_158 = arith.constant 2.000000e+00 : f32
    %175 = vector.broadcast %cst_158 : f32 to vector<8x1xf32>
    %176 = arith.subf %175, %174 : vector<8x1xf32>
    %177 = arith.mulf %173, %176 : vector<8x1xf32>
    %178 = tpu.reciprocal %154 {approx = true} : vector<8x1xf32> -> vector<8x1xf32>
    %179 = arith.mulf %154, %178 : vector<8x1xf32>
    %cst_159 = arith.constant 2.000000e+00 : f32
    %180 = vector.broadcast %cst_159 : f32 to vector<8x1xf32>
    %181 = arith.subf %180, %179 : vector<8x1xf32>
    %182 = arith.mulf %178, %181 : vector<8x1xf32>
    %183 = tpu.reciprocal %162 {approx = true} : vector<8x1xf32> -> vector<8x1xf32>
    %184 = arith.mulf %162, %183 : vector<8x1xf32>
    %cst_160 = arith.constant 2.000000e+00 : f32
    %185 = vector.broadcast %cst_160 : f32 to vector<8x1xf32>
    %186 = arith.subf %185, %184 : vector<8x1xf32>
    %187 = arith.mulf %183, %186 : vector<8x1xf32>
    %188 = tpu.reciprocal %170 {approx = true} : vector<8x1xf32> -> vector<8x1xf32>
    %189 = arith.mulf %170, %188 : vector<8x1xf32>
    %cst_161 = arith.constant 2.000000e+00 : f32
    %190 = vector.broadcast %cst_161 : f32 to vector<8x1xf32>
    %191 = arith.subf %190, %189 : vector<8x1xf32>
    %192 = arith.mulf %188, %191 : vector<8x1xf32>
    %193 = vector.broadcast %146 : vector<8x1xf32> to vector<8x16xf32>
    %194 = arith.subf %193, %144 : vector<8x16xf32>
    %195 = vector.broadcast %177 : vector<8x1xf32> to vector<8x16xf32>
    %196 = arith.mulf %194, %195 : vector<8x16xf32>
    %197 = vector.broadcast %154 : vector<8x1xf32> to vector<8x16xf32>
    %198 = arith.subf %197, %152 : vector<8x16xf32>
    %199 = vector.broadcast %182 : vector<8x1xf32> to vector<8x16xf32>
    %200 = arith.mulf %198, %199 : vector<8x16xf32>
    %201 = vector.broadcast %162 : vector<8x1xf32> to vector<8x16xf32>
    %202 = arith.subf %201, %160 : vector<8x16xf32>
    %203 = vector.broadcast %187 : vector<8x1xf32> to vector<8x16xf32>
    %204 = arith.mulf %202, %203 : vector<8x16xf32>
    %205 = vector.broadcast %170 : vector<8x1xf32> to vector<8x16xf32>
    %206 = arith.subf %205, %168 : vector<8x16xf32>
    %207 = vector.broadcast %192 : vector<8x1xf32> to vector<8x16xf32>
    %208 = arith.mulf %206, %207 : vector<8x16xf32>
    %209 = arith.mulf %146, %154 : vector<8x1xf32>
    %210 = math.log %209 : vector<8x1xf32>
    %211 = arith.mulf %162, %170 : vector<8x1xf32>
    %212 = math.log %211 : vector<8x1xf32>
    %cst_162 = arith.constant 0.000000e+00 : f32
    %213 = vector.broadcast %cst_162 : f32 to vector<8x16xf32>
    %214 = arith.cmpf oeq, %171, %213 : vector<8x16xf32>
    %215 = arith.extui %214 : vector<8x16xi1> to vector<8x16xi32>
    %216 = arith.sitofp %215 : vector<8x16xi32> to vector<8x16xf32>
    %cst_163 = arith.constant 0.000000e+00 : f32
    %217 = vector.broadcast %cst_163 : f32 to vector<8x16xf32>
    %218 = arith.cmpf oeq, %172, %217 : vector<8x16xf32>
    %219 = arith.extui %218 : vector<8x16xi1> to vector<8x16xi32>
    %220 = arith.sitofp %219 : vector<8x16xi32> to vector<8x16xf32>
    %cst_164 = arith.constant 0.000000e+00 : f32
    %221 = vector.broadcast %cst_164 : f32 to vector<8x16xf32>
    %222 = arith.subf %221, %216 : vector<8x16xf32>
    %cst_165 = arith.constant 9.99999971E-10 : f32
    %223 = vector.broadcast %cst_165 : f32 to vector<8x16xf32>
    %224 = arith.addf %196, %223 : vector<8x16xf32>
    %cst_166 = arith.constant 9.99999971E-10 : f32
    %225 = vector.broadcast %cst_166 : f32 to vector<8x16xf32>
    %226 = arith.addf %200, %225 : vector<8x16xf32>
    %227 = arith.mulf %224, %226 : vector<8x16xf32>
    %228 = math.log %227 : vector<8x16xf32>
    %229 = arith.mulf %222, %228 : vector<8x16xf32>
    %cst_167 = arith.constant 0.000000e+00 : f32
    %230 = vector.broadcast %cst_167 : f32 to vector<8x16xf32>
    %231 = arith.subf %230, %220 : vector<8x16xf32>
    %cst_168 = arith.constant 9.99999971E-10 : f32
    %232 = vector.broadcast %cst_168 : f32 to vector<8x16xf32>
    %233 = arith.addf %204, %232 : vector<8x16xf32>
    %cst_169 = arith.constant 9.99999971E-10 : f32
    %234 = vector.broadcast %cst_169 : f32 to vector<8x16xf32>
    %235 = arith.addf %208, %234 : vector<8x16xf32>
    %236 = arith.mulf %233, %235 : vector<8x16xf32>
    %237 = math.log %236 : vector<8x16xf32>
    %238 = arith.mulf %231, %237 : vector<8x16xf32>
    %cst_170 = arith.constant 0.000000e+00 : f32
    %239 = vector.broadcast %cst_170 : f32 to vector<8x16xf32>
    %240 = arith.cmpf ogt, %171, %239 : vector<8x16xf32>
    %cst_171 = arith.constant 1.000000e+00 : f32
    %241 = vector.broadcast %cst_171 : f32 to vector<8x16xf32>
    %242 = arith.select %240, %171, %241 : vector<8x16xi1>, vector<8x16xf32>
    %cst_172 = arith.constant 0.000000e+00 : f32
    %243 = vector.broadcast %cst_172 : f32 to vector<8x16xf32>
    %244 = arith.cmpf ogt, %171, %243 : vector<8x16xf32>
    %245 = math.log %242 : vector<8x16xf32>
    %cst_173 = arith.constant 2.000000e+00 : f32
    %246 = vector.broadcast %cst_173 : f32 to vector<8x16xf32>
    %247 = arith.mulf %246, %245 : vector<8x16xf32>
    %248 = arith.subf %247, %143 : vector<8x16xf32>
    %249 = arith.subf %248, %151 : vector<8x16xf32>
    %250 = vector.broadcast %210 : vector<8x1xf32> to vector<8x16xf32>
    %251 = arith.addf %249, %250 : vector<8x16xf32>
    %252 = arith.mulf %171, %251 : vector<8x16xf32>
    %cst_174 = arith.constant 0.000000e+00 : f32
    %253 = vector.broadcast %cst_174 : f32 to vector<8x16xf32>
    %254 = arith.select %244, %252, %253 : vector<8x16xi1>, vector<8x16xf32>
    %cst_175 = arith.constant 0.000000e+00 : f32
    %255 = vector.broadcast %cst_175 : f32 to vector<8x16xf32>
    %256 = arith.cmpf ogt, %172, %255 : vector<8x16xf32>
    %cst_176 = arith.constant 1.000000e+00 : f32
    %257 = vector.broadcast %cst_176 : f32 to vector<8x16xf32>
    %258 = arith.select %256, %172, %257 : vector<8x16xi1>, vector<8x16xf32>
    %cst_177 = arith.constant 0.000000e+00 : f32
    %259 = vector.broadcast %cst_177 : f32 to vector<8x16xf32>
    %260 = arith.cmpf ogt, %172, %259 : vector<8x16xf32>
    %261 = math.log %258 : vector<8x16xf32>
    %cst_178 = arith.constant 2.000000e+00 : f32
    %262 = vector.broadcast %cst_178 : f32 to vector<8x16xf32>
    %263 = arith.mulf %262, %261 : vector<8x16xf32>
    %264 = arith.subf %263, %159 : vector<8x16xf32>
    %265 = arith.subf %264, %167 : vector<8x16xf32>
    %266 = vector.broadcast %212 : vector<8x1xf32> to vector<8x16xf32>
    %267 = arith.addf %265, %266 : vector<8x16xf32>
    %268 = arith.mulf %172, %267 : vector<8x16xf32>
    %cst_179 = arith.constant 0.000000e+00 : f32
    %269 = vector.broadcast %cst_179 : f32 to vector<8x16xf32>
    %270 = arith.select %260, %268, %269 : vector<8x16xi1>, vector<8x16xf32>
    %271 = arith.addf %229, %254 : vector<8x16xf32>
    %272 = arith.addf %238, %270 : vector<8x16xf32>
    %273 = vector.broadcast %2 : f32 to vector<8x16xf32>
    %274 = arith.mulf %273, %272 : vector<8x16xf32>
    %275 = arith.addf %271, %274 : vector<8x16xf32>
    %276 = vector.shape_cast %275 : vector<8x16xf32> to vector<1x8x16xf32>
    %cst_180 = arith.constant dense<0.000000e+00> : vector<1xf32>
    %277 = vector.multi_reduction <add>, %276, %cst_180 [1, 2] : vector<1x8x16xf32> to vector<1xf32>
    %278 = vector.shape_cast %277 : vector<1xf32> to vector<1x1x1xf32>
    %279 = vector.extract %278[0, 0, 0] : f32 from vector<1x1x1xf32>
    %cst_181 = arith.constant 1.250000e-01 : f32
    %280 = arith.mulf %279, %cst_181 : f32
    %c0_182 = arith.constant 0 : index
    %c0_183 = arith.constant 0 : index
    %281 = memref.load %arg14[%c0_182, %c0_183] : memref<1x1xf32, #tpu.memory_space<smem>>
    memref.store %280, %arg14[%c0_182, %c0_183] : memref<1x1xf32, #tpu.memory_space<smem>>
    %c0_184 = arith.constant 0 : index
    %c0_185 = arith.constant 0 : index
    %282 = vector.load %arg7[%c0_184, %c0_185] : memref<8x32xf32, #tpu.memory_space<vmem>>, vector<8x32xf32>
    %c0_186 = arith.constant 0 : index
    %c0_187 = arith.constant 0 : index
    %283 = vector.load %arg8[%c0_186, %c0_187] : memref<8x32xf32, #tpu.memory_space<vmem>>, vector<8x32xf32>
    %284 = arith.addf %282, %283 : vector<8x32xf32>
    %cst_188 = arith.constant dense<0.000000e+00> : vector<32xf32>
    %285 = vector.multi_reduction <add>, %284, %cst_188 [0] : vector<8x32xf32> to vector<32xf32>
    %286 = vector.shape_cast %285 : vector<32xf32> to vector<1x32xf32>
    %cst_189 = arith.constant 6.250000e-02 : f32
    %287 = vector.broadcast %cst_189 : f32 to vector<1x32xf32>
    %288 = arith.mulf %286, %287 : vector<1x32xf32>
    %c0_190 = arith.constant 0 : index
    %c0_191 = arith.constant 0 : index
    %289 = vector.load %arg9[%c0_190, %c0_191] : memref<1x32xf32, #tpu.memory_space<vmem>>, vector<1x32xf32>
    %290 = vector.broadcast %0 : f32 to vector<1x32xf32>
    %291 = arith.mulf %290, %289 : vector<1x32xf32>
    %292 = vector.broadcast %1 : f32 to vector<1x32xf32>
    %293 = arith.mulf %292, %288 : vector<1x32xf32>
    %294 = arith.addf %291, %293 : vector<1x32xf32>
    %c0_192 = arith.constant 0 : index
    %c0_193 = arith.constant 0 : index
    %295 = vector.load %arg15[%c0_192, %c0_193] : memref<1x32xf32, #tpu.memory_space<vmem>>, vector<1x32xf32>
    tpu.vector_store %arg15[%c0_192, %c0_193], %294 {strides = array<i32>} : memref<1x32xf32, #tpu.memory_space<vmem>>, vector<1x32xf32>,
    %c0_194 = arith.constant 0 : index
    %c0_195 = arith.constant 0 : index
    %296 = vector.load %arg10[%c0_194, %c0_195] : memref<16x32xf32, #tpu.memory_space<vmem>>, vector<16x32xf32>
    %cst_196 = arith.constant dense<0.000000e+00> : vector<1x16xf32>
    %297 = tpu.matmul %294, %296, %cst_196 {dimension_numbers = #tpu.dot_dimension_numbers<[1], [1], [0], [0], [0, 0, 1, 0], [], []>} : vector<1x32xf32>, vector<16x32xf32>, vector<1x16xf32> -> vector<1x16xf32>
    %c0_197 = arith.constant 0 : index
    %c0_198 = arith.constant 0 : index
    %298 = vector.load %arg11[%c0_197, %c0_198] : memref<1x16xf32, #tpu.memory_space<vmem>>, vector<1x16xf32>
    %299 = arith.addf %297, %298 : vector<1x16xf32>
    %cst_199 = arith.constant dense<0xFF800000> : vector<1xf32>
    %300 = vector.multi_reduction <maximumf>, %299, %cst_199 [1] : vector<1x16xf32> to vector<1xf32>
    %301 = vector.shape_cast %300 : vector<1xf32> to vector<1x1xf32>
    %302 = vector.broadcast %301 : vector<1x1xf32> to vector<1x16xf32>
    %303 = arith.subf %299, %302 : vector<1x16xf32>
    %304 = math.exp %303 : vector<1x16xf32>
    %cst_200 = arith.constant dense<0.000000e+00> : vector<1xf32>
    %305 = vector.multi_reduction <add>, %304, %cst_200 [1] : vector<1x16xf32> to vector<1xf32>
    %306 = vector.shape_cast %305 : vector<1xf32> to vector<1x1xf32>
    %307 = tpu.reciprocal %306 {approx = true} : vector<1x1xf32> -> vector<1x1xf32>
    %308 = arith.mulf %306, %307 : vector<1x1xf32>
    %cst_201 = arith.constant 2.000000e+00 : f32
    %309 = vector.broadcast %cst_201 : f32 to vector<1x1xf32>
    %310 = arith.subf %309, %308 : vector<1x1xf32>
    %311 = arith.mulf %307, %310 : vector<1x1xf32>
    %312 = vector.broadcast %311 : vector<1x1xf32> to vector<1x16xf32>
    %313 = arith.mulf %304, %312 : vector<1x16xf32>
    %cst_202 = arith.constant 9.99999971E-10 : f32
    %314 = vector.broadcast %cst_202 : f32 to vector<1x16xf32>
    %315 = arith.addf %313, %314 : vector<1x16xf32>
    %316 = tpu.reciprocal %315 {approx = true} : vector<1x16xf32> -> vector<1x16xf32>
    %317 = arith.mulf %315, %316 : vector<1x16xf32>
    %cst_203 = arith.constant 2.000000e+00 : f32
    %318 = vector.broadcast %cst_203 : f32 to vector<1x16xf32>
    %319 = arith.subf %318, %317 : vector<1x16xf32>
    %320 = arith.mulf %316, %319 : vector<1x16xf32>
    %321 = vector.broadcast %320 : vector<1x16xf32> to vector<8x16xf32>
    %322 = arith.mulf %152, %321 : vector<8x16xf32>
    %323 = vector.broadcast %320 : vector<1x16xf32> to vector<8x16xf32>
    %324 = arith.mulf %144, %323 : vector<8x16xf32>
    %cst_204 = arith.constant dense<0.000000e+00> : vector<8xf32>
    %325 = vector.multi_reduction <add>, %322, %cst_204 [1] : vector<8x16xf32> to vector<8xf32>
    %326 = vector.shape_cast %325 : vector<8xf32> to vector<8x1xf32>
    %327 = tpu.reciprocal %326 {approx = true} : vector<8x1xf32> -> vector<8x1xf32>
    %328 = arith.mulf %326, %327 : vector<8x1xf32>
    %cst_205 = arith.constant 2.000000e+00 : f32
    %329 = vector.broadcast %cst_205 : f32 to vector<8x1xf32>
    %330 = arith.subf %329, %328 : vector<8x1xf32>
    %331 = arith.mulf %327, %330 : vector<8x1xf32>
    %332 = vector.broadcast %331 : vector<8x1xf32> to vector<8x16xf32>
    %333 = arith.mulf %322, %332 : vector<8x16xf32>
    %cst_206 = arith.constant dense<0.000000e+00> : vector<8xf32>
    %334 = vector.multi_reduction <add>, %324, %cst_206 [1] : vector<8x16xf32> to vector<8xf32>
    %335 = vector.shape_cast %334 : vector<8xf32> to vector<8x1xf32>
    %336 = tpu.reciprocal %335 {approx = true} : vector<8x1xf32> -> vector<8x1xf32>
    %337 = arith.mulf %335, %336 : vector<8x1xf32>
    %cst_207 = arith.constant 2.000000e+00 : f32
    %338 = vector.broadcast %cst_207 : f32 to vector<8x1xf32>
    %339 = arith.subf %338, %337 : vector<8x1xf32>
    %340 = arith.mulf %336, %339 : vector<8x1xf32>
    %341 = vector.broadcast %340 : vector<8x1xf32> to vector<8x16xf32>
    %342 = arith.mulf %324, %341 : vector<8x16xf32>
    %c0_208 = arith.constant 0 : index
    %c0_209 = arith.constant 0 : index
    %343 = vector.load %arg18[%c0_208, %c0_209] : memref<8x16xf32, #tpu.memory_space<vmem>>, vector<8x16xf32>
    %cst_210 = arith.constant 0.000000e+00 : f32
    %344 = vector.broadcast %cst_210 : f32 to vector<8x16xf32>
    %345 = arith.cmpf ogt, %343, %344 : vector<8x16xf32>
    %cst_211 = arith.constant 1.000000e+00 : f32
    %346 = vector.broadcast %cst_211 : f32 to vector<8x16xf32>
    %347 = arith.select %345, %346, %343 : vector<8x16xi1>, vector<8x16xf32>
    %348 = arith.mulf %347, %333 : vector<8x16xf32>
    %349 = arith.mulf %347, %342 : vector<8x16xf32>
    %350 = arith.mulf %348, %349 : vector<8x16xf32>
    %cst_212 = arith.constant dense<0.000000e+00> : vector<8xf32>
    %351 = vector.multi_reduction <add>, %350, %cst_212 [1] : vector<8x16xf32> to vector<8xf32>
    %352 = vector.shape_cast %351 : vector<8xf32> to vector<8x1xf32>
    %cst_213 = arith.constant 9.99999971E-10 : f32
    %353 = vector.broadcast %cst_213 : f32 to vector<8x1xf32>
    %354 = arith.addf %352, %353 : vector<8x1xf32>
    %355 = tpu.reciprocal %354 {approx = true} : vector<8x1xf32> -> vector<8x1xf32>
    %356 = arith.mulf %354, %355 : vector<8x1xf32>
    %cst_214 = arith.constant 2.000000e+00 : f32
    %357 = vector.broadcast %cst_214 : f32 to vector<8x1xf32>
    %358 = arith.subf %357, %356 : vector<8x1xf32>
    %359 = arith.mulf %355, %358 : vector<8x1xf32>
    %360 = vector.broadcast %359 : vector<8x1xf32> to vector<8x16xf32>
    %361 = arith.mulf %350, %360 : vector<8x16xf32>
    %362 = math.sqrt %361 : vector<8x16xf32>
    %cst_215 = arith.constant dense<0.000000e+00> : vector<8xf32>
    %363 = vector.multi_reduction <add>, %362, %cst_215 [1] : vector<8x16xf32> to vector<8xf32>
    %364 = vector.shape_cast %363 : vector<8xf32> to vector<8x1xf32>
    %cst_216 = arith.constant 9.99999971E-10 : f32
    %365 = vector.broadcast %cst_216 : f32 to vector<8x1xf32>
    %366 = arith.addf %364, %365 : vector<8x1xf32>
    %367 = tpu.reciprocal %366 {approx = true} : vector<8x1xf32> -> vector<8x1xf32>
    %368 = arith.mulf %366, %367 : vector<8x1xf32>
    %cst_217 = arith.constant 2.000000e+00 : f32
    %369 = vector.broadcast %cst_217 : f32 to vector<8x1xf32>
    %370 = arith.subf %369, %368 : vector<8x1xf32>
    %371 = arith.mulf %367, %370 : vector<8x1xf32>
    %372 = vector.broadcast %371 : vector<8x1xf32> to vector<8x16xf32>
    %373 = arith.mulf %362, %372 : vector<8x16xf32>
    %c0_218 = arith.constant 0 : index
    %c0_219 = arith.constant 0 : index
    %374 = vector.load %arg19[%c0_218, %c0_219] : memref<8x16xf32, #tpu.memory_space<vmem>>, vector<8x16xf32>
    tpu.vector_store %arg19[%c0_218, %c0_219], %373 {strides = array<i32>} : memref<8x16xf32, #tpu.memory_space<vmem>>, vector<8x16xf32>,
    %c0_220 = arith.constant 0 : index
    %375 = memref.load %arg1[%c0_220] : memref<8xi32, #tpu.memory_space<smem>>
    %c1_i32_221 = arith.constant 1 : i32
    %c0_i32_222 = arith.constant 0 : i32
    %c0_i32_223 = arith.constant 0 : i32
    %376 = tpu.memref_slice %arg19[%c0_i32_222, %c0_i32_223] : memref<8x16xf32, #tpu.memory_space<vmem>> -> memref<1x16xf32, #tpu.memory_space<vmem>>
    %c0_i32_224 = arith.constant 0 : i32
    %377 = tpu.memref_slice %arg16[%375, %c0_i32_224] : memref<64x16xf32, #tpu.memory_space<any>> -> memref<1x16xf32, #tpu.memory_space<any>>
    %378 = tpu.memref_slice %arg20[%c1_i32_221] : memref<2x!tpu.dma_semaphore, #tpu.memory_space<semaphore_mem>> -> memref<1x!tpu.dma_semaphore, #tpu.memory_space<semaphore_mem>>
    %379 = tpu.memref_squeeze %378 : memref<1x!tpu.dma_semaphore, #tpu.memory_space<semaphore_mem>> -> memref<!tpu.dma_semaphore, #tpu.memory_space<semaphore_mem>>
    tpu.enqueue_dma source(%376 : memref<1x16xf32, #tpu.memory_space<vmem>>) target(%377 : memref<1x16xf32, #tpu.memory_space<any>>) target_semaphore(%379 : memref<!tpu.dma_semaphore, #tpu.memory_space<semaphore_mem>>)
    %c1_225 = arith.constant 1 : index
    %380 = memref.load %arg1[%c1_225] : memref<8xi32, #tpu.memory_space<smem>>
    %c1_i32_226 = arith.constant 1 : i32
    %c1_i32_227 = arith.constant 1 : i32
    %c0_i32_228 = arith.constant 0 : i32
    %381 = tpu.memref_slice %arg19[%c1_i32_227, %c0_i32_228] : memref<8x16xf32, #tpu.memory_space<vmem>> -> memref<1x16xf32, #tpu.memory_space<vmem>>
    %c0_i32_229 = arith.constant 0 : i32
    %382 = tpu.memref_slice %arg16[%380, %c0_i32_229] : memref<64x16xf32, #tpu.memory_space<any>> -> memref<1x16xf32, #tpu.memory_space<any>>
    %383 = tpu.memref_slice %arg20[%c1_i32_226] : memref<2x!tpu.dma_semaphore, #tpu.memory_space<semaphore_mem>> -> memref<1x!tpu.dma_semaphore, #tpu.memory_space<semaphore_mem>>
    %384 = tpu.memref_squeeze %383 : memref<1x!tpu.dma_semaphore, #tpu.memory_space<semaphore_mem>> -> memref<!tpu.dma_semaphore, #tpu.memory_space<semaphore_mem>>
    tpu.enqueue_dma source(%381 : memref<1x16xf32, #tpu.memory_space<vmem>>) target(%382 : memref<1x16xf32, #tpu.memory_space<any>>) target_semaphore(%384 : memref<!tpu.dma_semaphore, #tpu.memory_space<semaphore_mem>>)
    %c2_230 = arith.constant 2 : index
    %385 = memref.load %arg1[%c2_230] : memref<8xi32, #tpu.memory_space<smem>>
    %c1_i32_231 = arith.constant 1 : i32
    %c2_i32_232 = arith.constant 2 : i32
    %c0_i32_233 = arith.constant 0 : i32
    %386 = tpu.memref_slice %arg19[%c2_i32_232, %c0_i32_233] : memref<8x16xf32, #tpu.memory_space<vmem>> -> memref<1x16xf32, #tpu.memory_space<vmem>>
    %c0_i32_234 = arith.constant 0 : i32
    %387 = tpu.memref_slice %arg16[%385, %c0_i32_234] : memref<64x16xf32, #tpu.memory_space<any>> -> memref<1x16xf32, #tpu.memory_space<any>>
    %388 = tpu.memref_slice %arg20[%c1_i32_231] : memref<2x!tpu.dma_semaphore, #tpu.memory_space<semaphore_mem>> -> memref<1x!tpu.dma_semaphore, #tpu.memory_space<semaphore_mem>>
    %389 = tpu.memref_squeeze %388 : memref<1x!tpu.dma_semaphore, #tpu.memory_space<semaphore_mem>> -> memref<!tpu.dma_semaphore, #tpu.memory_space<semaphore_mem>>
    tpu.enqueue_dma source(%386 : memref<1x16xf32, #tpu.memory_space<vmem>>) target(%387 : memref<1x16xf32, #tpu.memory_space<any>>) target_semaphore(%389 : memref<!tpu.dma_semaphore, #tpu.memory_space<semaphore_mem>>)
    %c3_235 = arith.constant 3 : index
    %390 = memref.load %arg1[%c3_235] : memref<8xi32, #tpu.memory_space<smem>>
    %c1_i32_236 = arith.constant 1 : i32
    %c3_i32_237 = arith.constant 3 : i32
    %c0_i32_238 = arith.constant 0 : i32
    %391 = tpu.memref_slice %arg19[%c3_i32_237, %c0_i32_238] : memref<8x16xf32, #tpu.memory_space<vmem>> -> memref<1x16xf32, #tpu.memory_space<vmem>>
    %c0_i32_239 = arith.constant 0 : i32
    %392 = tpu.memref_slice %arg16[%390, %c0_i32_239] : memref<64x16xf32, #tpu.memory_space<any>> -> memref<1x16xf32, #tpu.memory_space<any>>
    %393 = tpu.memref_slice %arg20[%c1_i32_236] : memref<2x!tpu.dma_semaphore, #tpu.memory_space<semaphore_mem>> -> memref<1x!tpu.dma_semaphore, #tpu.memory_space<semaphore_mem>>
    %394 = tpu.memref_squeeze %393 : memref<1x!tpu.dma_semaphore, #tpu.memory_space<semaphore_mem>> -> memref<!tpu.dma_semaphore, #tpu.memory_space<semaphore_mem>>
    tpu.enqueue_dma source(%391 : memref<1x16xf32, #tpu.memory_space<vmem>>) target(%392 : memref<1x16xf32, #tpu.memory_space<any>>) target_semaphore(%394 : memref<!tpu.dma_semaphore, #tpu.memory_space<semaphore_mem>>)
    %c4_240 = arith.constant 4 : index
    %395 = memref.load %arg1[%c4_240] : memref<8xi32, #tpu.memory_space<smem>>
    %c1_i32_241 = arith.constant 1 : i32
    %c4_i32_242 = arith.constant 4 : i32
    %c0_i32_243 = arith.constant 0 : i32
    %396 = tpu.memref_slice %arg19[%c4_i32_242, %c0_i32_243] : memref<8x16xf32, #tpu.memory_space<vmem>> -> memref<1x16xf32, #tpu.memory_space<vmem>>
    %c0_i32_244 = arith.constant 0 : i32
    %397 = tpu.memref_slice %arg16[%395, %c0_i32_244] : memref<64x16xf32, #tpu.memory_space<any>> -> memref<1x16xf32, #tpu.memory_space<any>>
    %398 = tpu.memref_slice %arg20[%c1_i32_241] : memref<2x!tpu.dma_semaphore, #tpu.memory_space<semaphore_mem>> -> memref<1x!tpu.dma_semaphore, #tpu.memory_space<semaphore_mem>>
    %399 = tpu.memref_squeeze %398 : memref<1x!tpu.dma_semaphore, #tpu.memory_space<semaphore_mem>> -> memref<!tpu.dma_semaphore, #tpu.memory_space<semaphore_mem>>
    tpu.enqueue_dma source(%396 : memref<1x16xf32, #tpu.memory_space<vmem>>) target(%397 : memref<1x16xf32, #tpu.memory_space<any>>) target_semaphore(%399 : memref<!tpu.dma_semaphore, #tpu.memory_space<semaphore_mem>>)
    %c5_245 = arith.constant 5 : index
    %400 = memref.load %arg1[%c5_245] : memref<8xi32, #tpu.memory_space<smem>>
    %c1_i32_246 = arith.constant 1 : i32
    %c5_i32_247 = arith.constant 5 : i32
    %c0_i32_248 = arith.constant 0 : i32
    %401 = tpu.memref_slice %arg19[%c5_i32_247, %c0_i32_248] : memref<8x16xf32, #tpu.memory_space<vmem>> -> memref<1x16xf32, #tpu.memory_space<vmem>>
    %c0_i32_249 = arith.constant 0 : i32
    %402 = tpu.memref_slice %arg16[%400, %c0_i32_249] : memref<64x16xf32, #tpu.memory_space<any>> -> memref<1x16xf32, #tpu.memory_space<any>>
    %403 = tpu.memref_slice %arg20[%c1_i32_246] : memref<2x!tpu.dma_semaphore, #tpu.memory_space<semaphore_mem>> -> memref<1x!tpu.dma_semaphore, #tpu.memory_space<semaphore_mem>>
    %404 = tpu.memref_squeeze %403 : memref<1x!tpu.dma_semaphore, #tpu.memory_space<semaphore_mem>> -> memref<!tpu.dma_semaphore, #tpu.memory_space<semaphore_mem>>
    tpu.enqueue_dma source(%401 : memref<1x16xf32, #tpu.memory_space<vmem>>) target(%402 : memref<1x16xf32, #tpu.memory_space<any>>) target_semaphore(%404 : memref<!tpu.dma_semaphore, #tpu.memory_space<semaphore_mem>>)
    %c6_250 = arith.constant 6 : index
    %405 = memref.load %arg1[%c6_250] : memref<8xi32, #tpu.memory_space<smem>>
    %c1_i32_251 = arith.constant 1 : i32
    %c6_i32_252 = arith.constant 6 : i32
    %c0_i32_253 = arith.constant 0 : i32
    %406 = tpu.memref_slice %arg19[%c6_i32_252, %c0_i32_253] : memref<8x16xf32, #tpu.memory_space<vmem>> -> memref<1x16xf32, #tpu.memory_space<vmem>>
    %c0_i32_254 = arith.constant 0 : i32
    %407 = tpu.memref_slice %arg16[%405, %c0_i32_254] : memref<64x16xf32, #tpu.memory_space<any>> -> memref<1x16xf32, #tpu.memory_space<any>>
    %408 = tpu.memref_slice %arg20[%c1_i32_251] : memref<2x!tpu.dma_semaphore, #tpu.memory_space<semaphore_mem>> -> memref<1x!tpu.dma_semaphore, #tpu.memory_space<semaphore_mem>>
    %409 = tpu.memref_squeeze %408 : memref<1x!tpu.dma_semaphore, #tpu.memory_space<semaphore_mem>> -> memref<!tpu.dma_semaphore, #tpu.memory_space<semaphore_mem>>
    tpu.enqueue_dma source(%406 : memref<1x16xf32, #tpu.memory_space<vmem>>) target(%407 : memref<1x16xf32, #tpu.memory_space<any>>) target_semaphore(%409 : memref<!tpu.dma_semaphore, #tpu.memory_space<semaphore_mem>>)
    %c7_255 = arith.constant 7 : index
    %410 = memref.load %arg1[%c7_255] : memref<8xi32, #tpu.memory_space<smem>>
    %c1_i32_256 = arith.constant 1 : i32
    %c7_i32_257 = arith.constant 7 : i32
    %c0_i32_258 = arith.constant 0 : i32
    %411 = tpu.memref_slice %arg19[%c7_i32_257, %c0_i32_258] : memref<8x16xf32, #tpu.memory_space<vmem>> -> memref<1x16xf32, #tpu.memory_space<vmem>>
    %c0_i32_259 = arith.constant 0 : i32
    %412 = tpu.memref_slice %arg16[%410, %c0_i32_259] : memref<64x16xf32, #tpu.memory_space<any>> -> memref<1x16xf32, #tpu.memory_space<any>>
    %413 = tpu.memref_slice %arg20[%c1_i32_256] : memref<2x!tpu.dma_semaphore, #tpu.memory_space<semaphore_mem>> -> memref<1x!tpu.dma_semaphore, #tpu.memory_space<semaphore_mem>>
    %414 = tpu.memref_squeeze %413 : memref<1x!tpu.dma_semaphore, #tpu.memory_space<semaphore_mem>> -> memref<!tpu.dma_semaphore, #tpu.memory_space<semaphore_mem>>
    tpu.enqueue_dma source(%411 : memref<1x16xf32, #tpu.memory_space<vmem>>) target(%412 : memref<1x16xf32, #tpu.memory_space<any>>) target_semaphore(%414 : memref<!tpu.dma_semaphore, #tpu.memory_space<semaphore_mem>>)
    %c1_i32_260 = arith.constant 1 : i32
    %c0_i32_261 = arith.constant 0 : i32
    %c0_i32_262 = arith.constant 0 : i32
    %415 = tpu.memref_slice %arg19[%c0_i32_261, %c0_i32_262] : memref<8x16xf32, #tpu.memory_space<vmem>> -> memref<1x16xf32, #tpu.memory_space<vmem>>
    %c0_i32_263 = arith.constant 0 : i32
    %c0_i32_264 = arith.constant 0 : i32
    %416 = tpu.memref_slice %arg16[%c0_i32_263, %c0_i32_264] : memref<64x16xf32, #tpu.memory_space<any>> -> memref<1x16xf32, #tpu.memory_space<any>>
    %417 = tpu.memref_slice %arg20[%c1_i32_260] : memref<2x!tpu.dma_semaphore, #tpu.memory_space<semaphore_mem>> -> memref<1x!tpu.dma_semaphore, #tpu.memory_space<semaphore_mem>>
    %418 = tpu.memref_squeeze %417 : memref<1x!tpu.dma_semaphore, #tpu.memory_space<semaphore_mem>> -> memref<!tpu.dma_semaphore, #tpu.memory_space<semaphore_mem>>
    tpu.wait_dma2 semaphore(%418 : memref<!tpu.dma_semaphore, #tpu.memory_space<semaphore_mem>>) src(%415 : memref<1x16xf32, #tpu.memory_space<vmem>>) dst(%416 : memref<1x16xf32, #tpu.memory_space<any>>)
    %c1_i32_265 = arith.constant 1 : i32
    %c1_i32_266 = arith.constant 1 : i32
    %c0_i32_267 = arith.constant 0 : i32
    %419 = tpu.memref_slice %arg19[%c1_i32_266, %c0_i32_267] : memref<8x16xf32, #tpu.memory_space<vmem>> -> memref<1x16xf32, #tpu.memory_space<vmem>>
    %c0_i32_268 = arith.constant 0 : i32
    %c0_i32_269 = arith.constant 0 : i32
    %420 = tpu.memref_slice %arg16[%c0_i32_268, %c0_i32_269] : memref<64x16xf32, #tpu.memory_space<any>> -> memref<1x16xf32, #tpu.memory_space<any>>
    %421 = tpu.memref_slice %arg20[%c1_i32_265] : memref<2x!tpu.dma_semaphore, #tpu.memory_space<semaphore_mem>> -> memref<1x!tpu.dma_semaphore, #tpu.memory_space<semaphore_mem>>
    %422 = tpu.memref_squeeze %421 : memref<1x!tpu.dma_semaphore, #tpu.memory_space<semaphore_mem>> -> memref<!tpu.dma_semaphore, #tpu.memory_space<semaphore_mem>>
    tpu.wait_dma2 semaphore(%422 : memref<!tpu.dma_semaphore, #tpu.memory_space<semaphore_mem>>) src(%419 : memref<1x16xf32, #tpu.memory_space<vmem>>) dst(%420 : memref<1x16xf32, #tpu.memory_space<any>>)
    %c1_i32_270 = arith.constant 1 : i32
    %c2_i32_271 = arith.constant 2 : i32
    %c0_i32_272 = arith.constant 0 : i32
    %423 = tpu.memref_slice %arg19[%c2_i32_271, %c0_i32_272] : memref<8x16xf32, #tpu.memory_space<vmem>> -> memref<1x16xf32, #tpu.memory_space<vmem>>
    %c0_i32_273 = arith.constant 0 : i32
    %c0_i32_274 = arith.constant 0 : i32
    %424 = tpu.memref_slice %arg16[%c0_i32_273, %c0_i32_274] : memref<64x16xf32, #tpu.memory_space<any>> -> memref<1x16xf32, #tpu.memory_space<any>>
    %425 = tpu.memref_slice %arg20[%c1_i32_270] : memref<2x!tpu.dma_semaphore, #tpu.memory_space<semaphore_mem>> -> memref<1x!tpu.dma_semaphore, #tpu.memory_space<semaphore_mem>>
    %426 = tpu.memref_squeeze %425 : memref<1x!tpu.dma_semaphore, #tpu.memory_space<semaphore_mem>> -> memref<!tpu.dma_semaphore, #tpu.memory_space<semaphore_mem>>
    tpu.wait_dma2 semaphore(%426 : memref<!tpu.dma_semaphore, #tpu.memory_space<semaphore_mem>>) src(%423 : memref<1x16xf32, #tpu.memory_space<vmem>>) dst(%424 : memref<1x16xf32, #tpu.memory_space<any>>)
    %c1_i32_275 = arith.constant 1 : i32
    %c3_i32_276 = arith.constant 3 : i32
    %c0_i32_277 = arith.constant 0 : i32
    %427 = tpu.memref_slice %arg19[%c3_i32_276, %c0_i32_277] : memref<8x16xf32, #tpu.memory_space<vmem>> -> memref<1x16xf32, #tpu.memory_space<vmem>>
    %c0_i32_278 = arith.constant 0 : i32
    %c0_i32_279 = arith.constant 0 : i32
    %428 = tpu.memref_slice %arg16[%c0_i32_278, %c0_i32_279] : memref<64x16xf32, #tpu.memory_space<any>> -> memref<1x16xf32, #tpu.memory_space<any>>
    %429 = tpu.memref_slice %arg20[%c1_i32_275] : memref<2x!tpu.dma_semaphore, #tpu.memory_space<semaphore_mem>> -> memref<1x!tpu.dma_semaphore, #tpu.memory_space<semaphore_mem>>
    %430 = tpu.memref_squeeze %429 : memref<1x!tpu.dma_semaphore, #tpu.memory_space<semaphore_mem>> -> memref<!tpu.dma_semaphore, #tpu.memory_space<semaphore_mem>>
    tpu.wait_dma2 semaphore(%430 : memref<!tpu.dma_semaphore, #tpu.memory_space<semaphore_mem>>) src(%427 : memref<1x16xf32, #tpu.memory_space<vmem>>) dst(%428 : memref<1x16xf32, #tpu.memory_space<any>>)
    %c1_i32_280 = arith.constant 1 : i32
    %c4_i32_281 = arith.constant 4 : i32
    %c0_i32_282 = arith.constant 0 : i32
    %431 = tpu.memref_slice %arg19[%c4_i32_281, %c0_i32_282] : memref<8x16xf32, #tpu.memory_space<vmem>> -> memref<1x16xf32, #tpu.memory_space<vmem>>
    %c0_i32_283 = arith.constant 0 : i32
    %c0_i32_284 = arith.constant 0 : i32
    %432 = tpu.memref_slice %arg16[%c0_i32_283, %c0_i32_284] : memref<64x16xf32, #tpu.memory_space<any>> -> memref<1x16xf32, #tpu.memory_space<any>>
    %433 = tpu.memref_slice %arg20[%c1_i32_280] : memref<2x!tpu.dma_semaphore, #tpu.memory_space<semaphore_mem>> -> memref<1x!tpu.dma_semaphore, #tpu.memory_space<semaphore_mem>>
    %434 = tpu.memref_squeeze %433 : memref<1x!tpu.dma_semaphore, #tpu.memory_space<semaphore_mem>> -> memref<!tpu.dma_semaphore, #tpu.memory_space<semaphore_mem>>
    tpu.wait_dma2 semaphore(%434 : memref<!tpu.dma_semaphore, #tpu.memory_space<semaphore_mem>>) src(%431 : memref<1x16xf32, #tpu.memory_space<vmem>>) dst(%432 : memref<1x16xf32, #tpu.memory_space<any>>)
    %c1_i32_285 = arith.constant 1 : i32
    %c5_i32_286 = arith.constant 5 : i32
    %c0_i32_287 = arith.constant 0 : i32
    %435 = tpu.memref_slice %arg19[%c5_i32_286, %c0_i32_287] : memref<8x16xf32, #tpu.memory_space<vmem>> -> memref<1x16xf32, #tpu.memory_space<vmem>>
    %c0_i32_288 = arith.constant 0 : i32
    %c0_i32_289 = arith.constant 0 : i32
    %436 = tpu.memref_slice %arg16[%c0_i32_288, %c0_i32_289] : memref<64x16xf32, #tpu.memory_space<any>> -> memref<1x16xf32, #tpu.memory_space<any>>
    %437 = tpu.memref_slice %arg20[%c1_i32_285] : memref<2x!tpu.dma_semaphore, #tpu.memory_space<semaphore_mem>> -> memref<1x!tpu.dma_semaphore, #tpu.memory_space<semaphore_mem>>
    %438 = tpu.memref_squeeze %437 : memref<1x!tpu.dma_semaphore, #tpu.memory_space<semaphore_mem>> -> memref<!tpu.dma_semaphore, #tpu.memory_space<semaphore_mem>>
    tpu.wait_dma2 semaphore(%438 : memref<!tpu.dma_semaphore, #tpu.memory_space<semaphore_mem>>) src(%435 : memref<1x16xf32, #tpu.memory_space<vmem>>) dst(%436 : memref<1x16xf32, #tpu.memory_space<any>>)
    %c1_i32_290 = arith.constant 1 : i32
    %c6_i32_291 = arith.constant 6 : i32
    %c0_i32_292 = arith.constant 0 : i32
    %439 = tpu.memref_slice %arg19[%c6_i32_291, %c0_i32_292] : memref<8x16xf32, #tpu.memory_space<vmem>> -> memref<1x16xf32, #tpu.memory_space<vmem>>
    %c0_i32_293 = arith.constant 0 : i32
    %c0_i32_294 = arith.constant 0 : i32
    %440 = tpu.memref_slice %arg16[%c0_i32_293, %c0_i32_294] : memref<64x16xf32, #tpu.memory_space<any>> -> memref<1x16xf32, #tpu.memory_space<any>>
    %441 = tpu.memref_slice %arg20[%c1_i32_290] : memref<2x!tpu.dma_semaphore, #tpu.memory_space<semaphore_mem>> -> memref<1x!tpu.dma_semaphore, #tpu.memory_space<semaphore_mem>>
    %442 = tpu.memref_squeeze %441 : memref<1x!tpu.dma_semaphore, #tpu.memory_space<semaphore_mem>> -> memref<!tpu.dma_semaphore, #tpu.memory_space<semaphore_mem>>
    tpu.wait_dma2 semaphore(%442 : memref<!tpu.dma_semaphore, #tpu.memory_space<semaphore_mem>>) src(%439 : memref<1x16xf32, #tpu.memory_space<vmem>>) dst(%440 : memref<1x16xf32, #tpu.memory_space<any>>)
    %c1_i32_295 = arith.constant 1 : i32
    %c7_i32_296 = arith.constant 7 : i32
    %c0_i32_297 = arith.constant 0 : i32
    %443 = tpu.memref_slice %arg19[%c7_i32_296, %c0_i32_297] : memref<8x16xf32, #tpu.memory_space<vmem>> -> memref<1x16xf32, #tpu.memory_space<vmem>>
    %c0_i32_298 = arith.constant 0 : i32
    %c0_i32_299 = arith.constant 0 : i32
    %444 = tpu.memref_slice %arg16[%c0_i32_298, %c0_i32_299] : memref<64x16xf32, #tpu.memory_space<any>> -> memref<1x16xf32, #tpu.memory_space<any>>
    %445 = tpu.memref_slice %arg20[%c1_i32_295] : memref<2x!tpu.dma_semaphore, #tpu.memory_space<semaphore_mem>> -> memref<1x!tpu.dma_semaphore, #tpu.memory_space<semaphore_mem>>
    %446 = tpu.memref_squeeze %445 : memref<1x!tpu.dma_semaphore, #tpu.memory_space<semaphore_mem>> -> memref<!tpu.dma_semaphore, #tpu.memory_space<semaphore_mem>>
    tpu.wait_dma2 semaphore(%446 : memref<!tpu.dma_semaphore, #tpu.memory_space<semaphore_mem>>) src(%443 : memref<1x16xf32, #tpu.memory_space<vmem>>) dst(%444 : memref<1x16xf32, #tpu.memory_space<any>>)
    return
  }
}

</mosaic_0001>

<bundles_post_ra>
// kernel: tpu_custom_call.1
= control target key start
LH: loop header
LB: loop body
LE: loop exit
PB: predicated region body
PF: predicated region fallthrough
CT: control target
= control target key end

     0   :  { %s2365_s0 = inlined_call_operand.vmem [shape: f32[3], index: 0, kind: input, shape index: {}]   ;;  %s2366_s1 = inlined_call_operand.vmem [shape: s32[8], index: 1, kind: input, shape index: {}]   ;;  %s2367_s2 = inlined_call_operand.vmem [shape: f32[8,16], index: 2, kind: input, shape index: {}]   ;;  %s2368_s3 = inlined_call_operand.vmem [shape: f32[8,16], index: 3, kind: input, shape index: {}]   ;;  %s2369_s4 = inlined_call_operand.vmem [shape: f32[8,16], index: 4, kind: input, shape index: {}]   ;;  %s2370_s5 = inlined_call_operand.vmem [shape: f32[8,16], index: 5, kind: input, shape index: {}]   ;;  %s2371_s6 = inlined_call_operand.vmem [shape: f32[8,16], index: 6, kind: input, shape index: {}]   ;;  %s2372_s7 = inlined_call_operand.vmem [shape: f32[8,32], index: 7, kind: input, shape index: {}]   ;;  %s2373_s8 = inlined_call_operand.vmem [shape: f32[8,32], index: 8, kind: input, shape index: {}]   ;;  %s2374_s9 = inlined_call_operand.vmem [shape: f32[1,32], index: 9, kind: input, shape index: {}]   ;;  %s2375_s10 = inlined_call_operand.vmem [shape: f32[16,32], index: 10, kind: input, shape index: {}]   ;;  %s2376_s11 = inlined_call_operand.vmem [shape: f32[1,16], index: 11, kind: input, shape index: {}]   ;;  %s2377_s12 = inlined_call_operand.vmem [shape: f32[64,16], index: 12, kind: input, shape index: {}, may-alias: {12,16}]   ;;  %s2378_s13 = inlined_call_operand.vmem [shape: f32[64,16], index: 13, kind: input, shape index: {}]   ;;  %s2379_s14 = inlined_call_operand.hbm [shape: f32[1,1], index: 14, kind: output, shape index: {0}]   ;;  %s2380_s15 = inlined_call_operand.hbm [shape: f32[1,32], index: 15, kind: output, shape index: {1}]   ;;  %s2381_s16 = inlined_call_operand.vmem [shape: f32[64,16], index: 16, kind: output, shape index: {2}, may-alias: {12,16}]  }
   0x1   :  { %2382 = sst [smem:[#allocation44_spill]] %s2365_s0 }
   0x2   :  { %22 = vsyncpa [#allocation9], 0 }
   0x3   :  { %23 = vsyncpa [#allocation11], 0 }
   0x4   :  { %24 = vsyncpa [#allocation8], 0 }
   0x5   :  { %25 = vsyncpa [#allocation7], 0  ;;  %s2383_s23 = sld [smem:[#allocation44_spill]]  ;;  %s42_s27 = sshll.u32 %s2366_s1, 4  ;;  %s43_s27 = int_to_ptr.vmem [resolvable:$true] %s42_s27 }
   0xb   :  { %s32_s24 = sshll.u32 %s2383_s23, 4  ;;  %s33_s24 = int_to_ptr.vmem [resolvable:$true] %s32_s24 }
   0xc   :  { %s2010_s28 = scalar_lea.vmem %s33_s24, 16  ;;  %p2015_p1 = scmp.lt.s32.totalorder %s33_s24, %s33_s24 }
   0xd   :  { %p2011_p0 = scmp.ne.s32.totalorder %s33_s24, %s2010_s28  ;;  %p2016_p2 = scmp.lt.s32.totalorder %s2010_s28, %s2010_s28 }
   0xf   :  { %p2017_p3 = por %p2016_p2, %p2015_p1 }
  0x11   :  { %p2018_p4 = pnand %p2017_p3, %p2011_p0 }
  0x13   :  { %2021 = shalt.err (!%p2018_p4)
}
  0x14   :  { %s2074_s29 = smov [#allocation6]   ;;  %s2022_s30 = scalar_lea.vmem %s43_s27, 16 }
  0x15   :  { %35 = dma.vmem_to_smem %s33_s24, 16, %s2074_s29, [#allocation9]  }
  0x16   :  { %p2023_p5 = scmp.ne.s32.totalorder %s43_s27, %s2022_s30  ;;  %p2027_p6 = scmp.lt.s32.totalorder %s43_s27, %s43_s27 }
  0x17   :  { %p2028_p7 = scmp.lt.s32.totalorder %s2022_s30, %s2022_s30 }
  0x19   :  { %p2029_p8 = por %p2028_p7, %p2027_p6 }
  0x1b   :  { %p2030_p9 = pnand %p2029_p8, %p2023_p5 }
  0x1d   :  { %2033 = shalt.err (!%p2030_p9)
}
  0x1e   :  { %s2075_s0 = smov [#allocation10]  }
  0x1f   :  { %45 = dma.vmem_to_smem %s43_s27, 16, %s2075_s0, [#allocation11]  }
  0x20   :  { %2062 = dma.done.wait [#allocation9], 16  }
  0x21   :  { %2063 = vsyncadd [#allocation9], 4294967280 }
  0x22   :  { %2064 = dma.done.wait [#allocation11], 16  }
  0x23   :  { %2065 = vsyncadd [#allocation11], 4294967280 }
  0x24   :  { %72 = sfence }
  0x25   :  { %s2171_s1 = sld [smem:[#allocation6]] }
  0x26   :  { %s2173_s17 = sld [smem:[#allocation6 + $0x1]] }
  0x27   :  { %s2175_s18 = sld [smem:[#allocation6 + $0x2]] }
  0x28   :  { %s76_s19 = sld [smem:[#allocation10]] }
  0x2e   :  { %s77_s22 = scalar_lea.vmem %s2377_s12, %s76_s19 }
  0x2f   :  { %v96_v0 = vld [vmem:[%s77_s22] sm:$0x1] }
  0x30   :  { %97 = vst [vmem:[#allocation2] sm:$0x1] %v96_v0 }
  0x31   :  { %123 = vsyncadd [#allocation5], 16  ;;  %s124_s25 = scalar_lea.vmem %s2378_s13, %s76_s19 }
  0x32   :  { %v143_v1 = vld [vmem:[%s124_s25] sm:$0x1] }
  0x33   :  { %144 = vst [vmem:[#allocation3] sm:$0x1] %v143_v1 }
  0x34   :  { %170 = vsyncadd [#allocation5], 16  ;;  %s1927_s26 = sld [smem:[#allocation10 + $0x1]] }
  0x3a   :  { %s172_s29 = scalar_lea.vmem %s2377_s12, %s1927_s26 }
  0x3b   :  { %v192_v2 = vld [vmem:[%s172_s29] sm:$0x1] }
  0x3c   :  { %193 = vst [vmem:[#allocation2 + $0x1] sm:$0x1] %v192_v2 }
  0x3d   :  { %219 = vsyncadd [#allocation5], 16  ;;  %s220_s20 = scalar_lea.vmem %s2378_s13, %s1927_s26 }
  0x3e   :  { %v240_v3 = vld [vmem:[%s220_s20] sm:$0x1] }
  0x3f   :  { %241 = vst [vmem:[#allocation3 + $0x1] sm:$0x1] %v240_v3 }
  0x40   :  { %267 = vsyncadd [#allocation5], 16  ;;  %s1928_s21 = sld [smem:[#allocation10 + $0x2]] }
  0x46   :  { %s269_s23 = scalar_lea.vmem %s2377_s12, %s1928_s21 }
  0x47   :  { %v289_v4 = vld [vmem:[%s269_s23] sm:$0x1] }
  0x48   :  { %290 = vst [vmem:[#allocation2 + $0x2] sm:$0x1] %v289_v4 }
  0x49   :  { %316 = vsyncadd [#allocation5], 16  ;;  %s317_s27 = scalar_lea.vmem %s2378_s13, %s1928_s21 }
  0x4a   :  { %v337_v5 = vld [vmem:[%s317_s27] sm:$0x1] }
  0x4b   :  { %338 = vst [vmem:[#allocation3 + $0x2] sm:$0x1] %v337_v5 }
  0x4c   :  { %364 = vsyncadd [#allocation5], 16  ;;  %s1929_s28 = sld [smem:[#allocation10 + $0x3]] }
  0x52   :  { %s366_s30 = scalar_lea.vmem %s2377_s12, %s1929_s28 }
  0x53   :  { %v386_v6 = vld [vmem:[%s366_s30] sm:$0x1] }
  0x54   :  { %387 = vst [vmem:[#allocation2 + $0x3] sm:$0x1] %v386_v6 }
  0x55   :  { %413 = vsyncadd [#allocation5], 16  ;;  %s414_s19 = scalar_lea.vmem %s2378_s13, %s1929_s28 }
  0x56   :  { %v434_v7 = vld [vmem:[%s414_s19] sm:$0x1] }
  0x57   :  { %435 = vst [vmem:[#allocation3 + $0x3] sm:$0x1] %v434_v7 }
  0x58   :  { %461 = vsyncadd [#allocation5], 16  ;;  %s1930_s22 = sld [smem:[#allocation10 + $0x4]] }
  0x5e   :  { %s463_s24 = scalar_lea.vmem %s2377_s12, %s1930_s22 }
  0x5f   :  { %v483_v8 = vld [vmem:[%s463_s24] sm:$0x1] }
  0x60   :  { %484 = vst [vmem:[#allocation2 + $0x4] sm:$0x1] %v483_v8 }
  0x61   :  { %510 = vsyncadd [#allocation5], 16  ;;  %s511_s26 = scalar_lea.vmem %s2378_s13, %s1930_s22 }
  0x62   :  { %v531_v9 = vld [vmem:[%s511_s26] sm:$0x1] }
  0x63   :  { %532 = vst [vmem:[#allocation3 + $0x4] sm:$0x1] %v531_v9 }
  0x64   :  { %558 = vsyncadd [#allocation5], 16  ;;  %s1931_s29 = sld [smem:[#allocation10 + $0x5]] }
  0x6a   :  { %s560_s0 = scalar_lea.vmem %s2377_s12, %s1931_s29 }
  0x6b   :  { %v580_v10 = vld [vmem:[%s560_s0] sm:$0x1] }
  0x6c   :  { %581 = vst [vmem:[#allocation2 + $0x5] sm:$0x1] %v580_v10 }
  0x6d   :  { %607 = vsyncadd [#allocation5], 16  ;;  %s608_s21 = scalar_lea.vmem %s2378_s13, %s1931_s29 }
  0x6e   :  { %v628_v11 = vld [vmem:[%s608_s21] sm:$0x1] }
  0x6f   :  { %629 = vst [vmem:[#allocation3 + $0x5] sm:$0x1] %v628_v11 }
  0x70   :  { %655 = vsyncadd [#allocation5], 16  ;;  %s1932_s23 = sld [smem:[#allocation10 + $0x6]] }
  0x76   :  { %s657_s25 = scalar_lea.vmem %s2377_s12, %s1932_s23 }
  0x77   :  { %v677_v12 = vld [vmem:[%s657_s25] sm:$0x1] }
  0x78   :  { %678 = vst [vmem:[#allocation2 + $0x6] sm:$0x1] %v677_v12 }
  0x79   :  { %704 = vsyncadd [#allocation5], 16  ;;  %s705_s28 = scalar_lea.vmem %s2378_s13, %s1932_s23 }
  0x7a   :  { %v725_v13 = vld [vmem:[%s705_s28] sm:$0x1] }
  0x7b   :  { %726 = vst [vmem:[#allocation3 + $0x6] sm:$0x1] %v725_v13 }
  0x7c   :  { %752 = vsyncadd [#allocation5], 16  ;;  %s1933_s30 = sld [smem:[#allocation10 + $0x7]] }
  0x82   :  { %s754_s20 = scalar_lea.vmem %s2377_s12, %s1933_s30 }
  0x83   :  { %v774_v14 = vld [vmem:[%s754_s20] sm:$0x1] }
  0x84   :  { %775 = vst [vmem:[#allocation2 + $0x7] sm:$0x1] %v774_v14 }
  0x85   :  { %801 = vsyncadd [#allocation5], 16  ;;  %s802_s22 = scalar_lea.vmem %s2378_s13, %s1933_s30 }
  0x86   :  { %v822_v15 = vld [vmem:[%s802_s22] sm:$0x1] }
  0x87   :  { %823 = vst [vmem:[#allocation3 + $0x7] sm:$0x1] %v822_v15 }
  0x88   :  { %849 = vsyncadd [#allocation5], 16 }
  0x89   :  { %2066 = dma.done.wait [#allocation5], 256 }
  0x8a   :  { %2067 = vsyncadd [#allocation5], 4294967040  ;;  %v2076_v16 = vmov 0.0   ;;  %vm2077_vm0 = vmmov 0   ;;  %v1014_v17 = vld [vmem:[%s2372_s7] sm:$0xff]  ;;  %vm1017_vm1 = vcmask 261120   ;;  %v1027_v29 = vstv %s2171_s1 }
  0x8b   :  { %1951 = vmatprep.subr.mxu0 %v2076_v16  ;;  %1955 = vmatprep.mubr.msk.f32.mxu0 %vm2077_vm0, %v2076_v16  ;;  %v1015_v18 = vld [vmem:[%s2373_s8] sm:$0xff]  ;;  %v1035_v19 = vld [vmem:[%s2375_s10 + $0x8] sm:$0xff]  ;;  %v1029_v31 = vstv %s2173_s17  ;;  %vm1032_vm2 = vcmask 253952   ;;  %vm1116_vm3 = vcmask 122880   ;;  %vm884_vm4 = vcmask 130048   ;;  %s1190_s20 = sld [smem:[#allocation10]] }
  0x8c   :  { %v1016_v20 = vadd.f32 %v1015_v18, %v1014_v17  ;;  %1952 = vmatpush3.xpose.msk.msra.mxu0 %vm1017_vm1, %v1035_v19  ;;  %v1034_v21 = vld [vmem:[%s2375_s10] sm:$0xff]  ;;  %v1136_v17 = vlaneseq }
  0x8d   :  { %1953 = vmatprep.subr.mxu0 %v2076_v16  ;;  %v1026_v28 = vld [vmem:[%s2374_s9] sm:$0x1] }
  0x8e   :  { %v1018_v22 = vsel %vm1017_vm1, %v1016_v20, 0.0  ;;  %v1028_v33 = vmul.f32 %v1027_v29, %v1026_v28  ;;  %v1036_v36 = vld [vmem:[%s2376_s11] sm:$0x1]  ;;  %v1137_v18 = vshrl.u32 %v1136_v17, 7 }
  0x8f   :  { %v1019_v23 = vrot.slane %v1018_v22, 4  ;;  %v883_v41 = vld [vmem:[%s2367_s2] sm:$0xff] }
  0x90   :  { %1954 = vmatpush3.xpose.msk.msra.mxu0 %vm1017_vm1, %v1034_v21  ;;  %v894_v42 = vld [vmem:[%s2368_s3] sm:$0xff]  ;;  %v885_v43 = vsel %vm884_vm4, %v883_v41, -inf }
  0x91   :  { %v1020_v24 = vadd.f32 %v1019_v23, %v1018_v22  ;;  %886 = vmax.xlane.f32.xlu1 %v885_v43  ;;  %v895_v44 = vsel %vm884_vm4, %v894_v42, -inf  ;;  %v914_v45 = vld [vmem:[%s2370_s5] sm:$0xff]  ;;  %v1138_v22 = vsub.s32 0, %v1137_v18  ;;  %s1191_s22 = scalar_lea.vmem %s2381_s16, %s1190_s20 }
  0x92   :  { %v915_v46 = vsel %vm884_vm4, %v914_v45, -inf  ;;  %v904_v51 = vld [vmem:[%s2369_s4] sm:$0xff] }
  0x93   :  { %v1021_v25 = vrot.slane %v1020_v24, 2  ;;  %v905_v53 = vsel %vm884_vm4, %v904_v51, -inf  ;;  %v2270_v54 = vld [vmem:[#allocation2] sm:$0xff] }
  0x94   :  { %vm976_vm5 = vcmp.gt.f32.partialorder %v2270_v54, 0.0  ;;  %vm956_vm9 = vcmp.eq.f32.partialorder %v2270_v54, 0.0 }
  0x95   :  { %v1022_v26 = vadd.f32 %v1021_v25, %v1020_v24  ;;  %896 = vmax.xlane.f32.xlu1 %v895_v44  ;;  %v977_v55 = vsel %vm976_vm5, %v2270_v54, 1.0 }
  0x97   :  { %v1023_v27 = vrot.slane %v1022_v26, 1 }
  0x99   :  { %v1024_v30 = vadd.f32 %v1023_v27, %v1022_v26  ;;  %916 = vmax.xlane.f32.xlu1 %v915_v46  ;;  %v1158_v46 = vld [vmem:[#allocation3] sm:$0xff] }
  0x9a   :  { %vm1159_vm7 = vcmp.gt.f32.partialorder %v1158_v46, 0.0 }
  0x9b   :  { %v1025_v32 = vmul.f32 0.0625, %v1024_v30 }
  0x9d   :  { %v1030_v34 = vmul.f32 %v1029_v31, %v1025_v32 }
  0x9f   :  { %v1031_v35 = vadd.f32 %v1030_v34, %v1028_v33 }
  0xa1   :  { %1033 = vst.msk [vmem:[#allocation13] sm:$0x1] %vm1032_vm2, %v1031_v35  ;;  %1956 = vmatmul.mubr.msk.f32.vlgmr.msra.gmra.mxu0 %vm1017_vm1, %v1031_v35 }
 0x11a   :  { %v887_v57 = vpop.xlane.xlu1 %886 }
 0x11b   :  { %v888_v60 = vsub.f32 %v883_v41, %v887_v57 }
 0x11d   :  { %v889_v13 = vmul.f32 1.442695, %v888_v60 }
 0x11e   :  { %v897_v61 = vpop.xlane.xlu1 %896 }
 0x11f   :  { %v898_v63 = vsub.f32 %v894_v42, %v897_v61 }
 0x121   :  { %v899_v11 = vmul.f32 1.442695, %v898_v63 }
 0x122   :  { %v917_v8 = vpop.xlane.xlu1 %916 }
 0x123   :  { %v2278_v10 = vsub.f32 %v914_v45, %v917_v8 }
 0x125   :  { %v919_v14 = vmul.f32 1.442695, %v2278_v10 }
 0x161   :  { %v1112_v37 = vpop.f32.mrf.mxu0 }
 0x162   :  { %v1113_v38 = vadd.f32 %v1112_v37, %v1036_v36 }
 0x163   :  { %v1957_v39 = vpop.f32.mrf.mxu0 }
 0x164   :  { %v1117_v40 = vsel %vm1116_vm3, %v1113_v38, -inf  ;;  %v2307_v39 = vld [vmem:[%s2371_s6] sm:$0xff] }
 0x165   :  { %1118 = vmax.xlane.f32.xlu0 %v1117_v40  ;;  %vm986_vm6 = vcmp.gt.f32.partialorder %v2307_v39, 0.0  ;;  %vm959_vm8 = vcmp.eq.f32.partialorder %v2307_v39, 0.0 }
 0x166   :  { %v987_v42 = vsel %vm986_vm6, %v2307_v39, 1.0 }
 0x1ee   :  { %v1119_v47 = vpop.xlane.xlu0 %1118 }
 0x1ef   :  { %v1120_v48 = vsub.f32 %v1113_v38, %v1119_v47 }
 0x1f1   :  { %v1121_v49 = vmul.f32 1.442695, %v1120_v48 }
 0x1f3   :  { %1966 = vpow2.f32 %v1121_v49 }
 0x1f4   :  { %1968 = vlog2.f32 %v977_v55 }
 0x200   :  { %v1967_v50 = vpop.eup %1966 }
 0x201   :  { %v1123_v52 = vsel %vm1116_vm3, %v1967_v50, 0.0  ;;  %v1969_v56 = vpop.eup %1968 }
 0x202   :  { %1124 = vadd.xlane.f32.xlu0 %v1123_v52  ;;  %v979_v58 = vmul.f32 0.6931472, %v1969_v56 }
 0x204   :  { %v980_v59 = vmul.f32 2.0, %v979_v58 }
 0x206   :  { %906 = vmax.xlane.f32.xlu0 %v905_v53  ;;  %v981_v62 = vsub.f32 %v980_v59, %v888_v60  ;;  %v1160_v60 = vsel %vm1159_vm7, 1.0, %v1158_v46 }
 0x208   :  { %v2276_v0 = vsub.f32 %v981_v62, %v898_v63 }
 0x28b   :  { %v1125_v1 = vpop.xlane.xlu0 %1124 }
 0x28c   :  { %1970 = vrcp.f32 %v1125_v1 }
 0x28f   :  { %v907_v9 = vpop.xlane.xlu0 %906 }
 0x290   :  { %v2280_v12 = vsub.f32 %v904_v51, %v907_v9 }
 0x292   :  { %v909_v15 = vmul.f32 1.442695, %v2280_v12 }
 0x299   :  { %v1971_v2 = vpop.eup %1970 }
 0x29a   :  { %v1127_v3 = vmul.f32 %v1971_v2, %v1125_v1 }
 0x29c   :  { %v1128_v4 = vsub.f32 2.0, %v1127_v3 }
 0x29e   :  { %v1129_v5 = vmul.f32 %v1971_v2, %v1128_v4 }
 0x2a0   :  { %v1130_v6 = vmul.f32 %v1967_v50, %v1129_v5 }
 0x2a2   :  { %v1131_v7 = vadd.f32 1e-09, %v1130_v6 }
 0x2a4   :  { %1972 = vrcp.f32 %v1131_v7 }
 0x2a5   :  { %1974 = vpow2.f32 %v899_v11 }
 0x2a6   :  { %1976 = vpow2.f32 %v889_v13 }
 0x2a7   :  { %1978 = vpow2.f32 %v919_v14 }
 0x2a8   :  { %1980 = vpow2.f32 %v909_v15 }
 0x2b1   :  { %v1973_v19 = vpop.eup %1972 }
 0x2b2   :  { %v1133_v20 = vmul.f32 %v1973_v19, %v1131_v7  ;;  %v2284_v24 = vpop.eup %1974 }
 0x2b3   :  { %v2286_v26 = vpop.eup %1976  ;;  %v901_v36 = vsel %vm884_vm4, %v2284_v24, 0.0 }
 0x2b4   :  { %v1134_v21 = vsub.f32 2.0, %v1133_v20  ;;  %v2288_v27 = vpop.eup %1978  ;;  %v891_v35 = vsel %vm884_vm4, %v2286_v26, 0.0 }
 0x2b5   :  { %v2292_v30 = vpop.eup %1980  ;;  %v921_v34 = vsel %vm884_vm4, %v2288_v27, 0.0 }
 0x2b6   :  { %v1135_v23 = vmul.f32 %v1973_v19, %v1134_v21  ;;  %v911_v33 = vsel %vm884_vm4, %v2292_v30, 0.0 }
 0x2b8   :  { %v1139_v25 = vrot.slane %v1135_v23, %v1138_v22 }
 0x2ba   :  { %v1141_v28 = vmul.f32 %v2286_v26, %v1139_v25  ;;  %v1140_v29 = vmul.f32 %v2284_v24, %v1139_v25 }
 0x2bc   :  { %v1150_v31 = vsel %vm884_vm4, %v1141_v28, 0.0  ;;  %v1142_v32 = vsel %vm884_vm4, %v1140_v29, 0.0 }
 0x2bd   :  { %1151 = vadd.xlane.f32.xlu1 %v1150_v31  ;;  %1143 = vadd.xlane.f32.xlu0 %v1142_v32 }
 0x2c1   :  { %912 = vadd.xlane.f32.xlu0 %v911_v33  ;;  %922 = vadd.xlane.f32.xlu1 %v921_v34 }
 0x2c5   :  { %892 = vadd.xlane.f32.xlu0 %v891_v35  ;;  %902 = vadd.xlane.f32.xlu1 %v901_v36 }
 0x346   :  { %v1144_v37 = vpop.xlane.xlu0 %1143  ;;  %v1152_v38 = vpop.xlane.xlu1 %1151 }
 0x347   :  { %1982 = vrcp.f32 %v1144_v37 }
 0x348   :  { %1984 = vrcp.f32 %v1152_v38 }
 0x34a   :  { %v913_v40 = vpop.xlane.xlu0 %912  ;;  %v923_v41 = vpop.xlane.xlu1 %922 }
 0x34b   :  { %1986 = vrcp.f32 %v913_v40  ;;  %v953_v51 = vmul.f32 %v923_v41, %v913_v40  ;;  %v946_v6 = vsub.f32 %v913_v40, %v2292_v30  ;;  %v948_v13 = vsub.f32 %v923_v41, %v2288_v27 }
 0x34c   :  { %1988 = vrcp.f32 %v923_v41 }
 0x34e   :  { %v893_v43 = vpop.xlane.xlu0 %892  ;;  %v903_v44 = vpop.xlane.xlu1 %902 }
 0x34f   :  { %1990 = vrcp.f32 %v893_v43  ;;  %v950_v63 = vmul.f32 %v903_v44, %v893_v43  ;;  %v944_v31 = vsub.f32 %v903_v44, %v2284_v24 }
 0x350   :  { %1992 = vrcp.f32 %v903_v44 }
 0x351   :  { %1994 = vlog2.f32 %v987_v42 }
 0x352   :  { %1996 = vlog2.f32 %v953_v51 }
 0x353   :  { %1998 = vlog2.f32 %v950_v63 }
 0x354   :  { %v1983_v45 = vpop.eup %1982 }
 0x355   :  { %v1985_v47 = vpop.eup %1984  ;;  %v1146_v48 = vmul.f32 %v1983_v45, %v1144_v37 }
 0x356   :  { %v1154_v49 = vmul.f32 %v1985_v47, %v1152_v38 }
 0x357   :  { %v1147_v50 = vsub.f32 2.0, %v1146_v48  ;;  %v1934_v48 = vsel %vm956_vm9, 1.0, %v2076_v16 }
 0x358   :  { %v1987_v52 = vpop.eup %1986  ;;  %v1155_v53 = vsub.f32 2.0, %v1154_v49  ;;  %v962_v51 = vsub.f32 0.0, %v1934_v48 }
 0x359   :  { %v1989_v55 = vpop.eup %1988  ;;  %v1148_v56 = vmul.f32 %v1983_v45, %v1147_v50  ;;  %v935_v57 = vmul.f32 %v1987_v52, %v913_v40 }
 0x35a   :  { %v1156_v58 = vmul.f32 %v1985_v47, %v1155_v53  ;;  %v939_v59 = vmul.f32 %v1989_v55, %v923_v41 }
 0x35b   :  { %v1149_v61 = vmul.f32 %v1148_v56, %v1140_v29  ;;  %v936_v62 = vsub.f32 2.0, %v935_v57 }
 0x35c   :  { %v1991_v1 = vpop.eup %1990  ;;  %v1157_v2 = vmul.f32 %v1156_v58, %v1141_v28  ;;  %v940_v3 = vsub.f32 2.0, %v939_v59  ;;  %v942_v28 = vsub.f32 %v893_v43, %v2286_v26  ;;  %v998_v58 = vstv %s2175_s18 }
 0x35d   :  { %v1993_v4 = vpop.eup %1992  ;;  %v937_v5 = vmul.f32 %v1987_v52, %v936_v62  ;;  %v927_v7 = vmul.f32 %v1991_v1, %v893_v43  ;;  %v1161_v8 = vmul.f32 %v1160_v60, %v1149_v61 }
 0x35e   :  { %v1995_v9 = vpop.eup %1994  ;;  %v941_v11 = vmul.f32 %v1989_v55, %v940_v3  ;;  %v931_v14 = vmul.f32 %v1993_v4, %v903_v44  ;;  %v1162_v15 = vmul.f32 %v1160_v60, %v1157_v2  ;;  %v1935_v44 = vsel %vm959_vm8, 1.0, %v2076_v16 }
 0x35f   :  { %v947_v17 = vmul.f32 %v946_v6, %v937_v5  ;;  %v928_v18 = vsub.f32 2.0, %v927_v7  ;;  %v989_v22 = vmul.f32 0.6931472, %v1995_v9  ;;  %v1997_v38 = vpop.eup %1996  ;;  %v969_v46 = vsub.f32 0.0, %v1935_v44 }
 0x360   :  { %v949_v19 = vmul.f32 %v948_v13, %v941_v11  ;;  %v932_v20 = vsub.f32 2.0, %v931_v14  ;;  %v1163_v21 = vmul.f32 %v1162_v15, %v1161_v8  ;;  %v955_v26 = vmul.f32 0.6931472, %v1997_v38  ;;  %v1999_v42 = vpop.eup %1998 }
 0x361   :  { %v970_v23 = vadd.f32 1e-09, %v947_v17  ;;  %v929_v25 = vmul.f32 %v1991_v1, %v928_v18  ;;  %v990_v35 = vmul.f32 2.0, %v989_v22  ;;  %v952_v43 = vmul.f32 0.6931472, %v1999_v42 }
 0x362   :  { %v971_v29 = vadd.f32 1e-09, %v949_v19  ;;  %v933_v30 = vmul.f32 %v1993_v4, %v932_v20  ;;  %v1164_v32 = vsel %vm884_vm4, %v1163_v21, 0.0 }
 0x363   :  { %v943_v27 = vmul.f32 %v942_v28, %v929_v25  ;;  %1165 = vadd.xlane.f32.xlu0 %v1164_v32  ;;  %v991_v41 = vsub.f32 %v990_v35, %v2280_v12  ;;  %v983_v12 = vadd.f32 %v2276_v0, %v952_v43 }
 0x364   :  { %v972_v33 = vmul.f32 %v971_v29, %v970_v23  ;;  %v945_v34 = vmul.f32 %v944_v31, %v933_v30 }
 0x365   :  { %v963_v36 = vadd.f32 1e-09, %v943_v27  ;;  %v992_v24 = vsub.f32 %v991_v41, %v2278_v10  ;;  %v984_v10 = vmul.f32 %v983_v12, %v2270_v54 }
 0x366   :  { %2000 = vlog2.f32 %v972_v33  ;;  %v964_v37 = vadd.f32 1e-09, %v945_v34 }
 0x367   :  { %v993_v45 = vadd.f32 %v992_v24, %v955_v26  ;;  %v985_v16 = vsel %vm976_vm5, %v984_v10, 0.0 }
 0x368   :  { %v965_v40 = vmul.f32 %v964_v37, %v963_v36 }
 0x369   :  { %v994_v49 = vmul.f32 %v993_v45, %v2307_v39 }
 0x36a   :  { %2002 = vlog2.f32 %v965_v40 }
 0x36b   :  { %v995_v55 = vsel %vm986_vm6, %v994_v49, 0.0 }
 0x373   :  { %v2001_v47 = vpop.eup %2000 }
 0x374   :  { %v974_v50 = vmul.f32 0.6931472, %v2001_v47 }
 0x376   :  { %v975_v52 = vmul.f32 %v974_v50, %v969_v46 }
 0x377   :  { %v2003_v53 = vpop.eup %2002 }
 0x378   :  { %v967_v56 = vmul.f32 0.6931472, %v2003_v53  ;;  %v997_v57 = vadd.f32 %v995_v55, %v975_v52 }
 0x37a   :  { %v968_v59 = vmul.f32 %v967_v56, %v962_v51  ;;  %v999_v0 = vmul.f32 %v998_v58, %v997_v57 }
 0x37c   :  { %v996_v60 = vadd.f32 %v985_v16, %v968_v59 }
 0x37e   :  { %v1000_v61 = vadd.f32 %v999_v0, %v996_v60 }
 0x380   :  { %v1001_v62 = vsel %vm884_vm4, %v1000_v61, 0.0 }
 0x381   :  { %1002 = vadd.xlane.f32.xlu1 %v1001_v62 }
 0x3ec   :  { %v1166_v63 = vpop.xlane.xlu0 %1165 }
 0x3ed   :  { %v1167_v1 = vadd.f32 1e-09, %v1166_v63 }
 0x3ef   :  { %2004 = vrcp.f32 %v1167_v1 }
 0x3fc   :  { %v2005_v2 = vpop.eup %2004 }
 0x3fd   :  { %v1169_v3 = vmul.f32 %v2005_v2, %v1167_v1 }
 0x3ff   :  { %v1170_v39 = vsub.f32 2.0, %v1169_v3 }
 0x401   :  { %v1171_v4 = vmul.f32 %v2005_v2, %v1170_v39 }
 0x403   :  { %v1172_v5 = vmul.f32 %v1171_v4, %v1163_v21 }
 0x405   :  { %2006 = vrsqrt.f32 %v1172_v5  ;;  %vm1175_vm10 = vcmp.eq.f32.partialorder %v1172_v5, inf  ;;  %v1178_v15 = vand.u32 2147483648, %v1172_v5  ;;  %vm1177_vm11 = vcmp.eq.f32.partialorder %v1172_v5, 0.0 }
 0x40a   :  { %v1003_v6 = vpop.xlane.xlu1 %1002 }
 0x40b   :  { %v1004_v7 = vrot.slane %v1003_v6, 4 }
 0x40d   :  { %v1005_v8 = vadd.f32 %v1004_v7, %v1003_v6 }
 0x40f   :  { %v1006_v54 = vrot.slane %v1005_v8, 2 }
 0x411   :  { %v1007_v9 = vadd.f32 %v1006_v54, %v1005_v8 }
 0x412   :  { %v2007_v11 = vpop.eup %2006 }
 0x413   :  { %v1008_v13 = vrot.slane %v1007_v9, 1  ;;  %v1174_v14 = vmul.f32 %v2007_v11, %v1172_v5 }
 0x415   :  { %v1009_v17 = vadd.f32 %v1008_v13, %v1007_v9  ;;  %v1176_v18 = vsel %vm1175_vm10, %v1172_v5, %v1174_v14 }
 0x416   :  { %v1179_v19 = vsel %vm1177_vm11, %v1178_v15, %v1176_v18 }
 0x417   :  { %1958 = vpush %v1009_v17  ;;  %v1180_v20 = vsel %vm884_vm4, %v1179_v19, 0.0 }
 0x418   :  { %1181 = vadd.xlane.f32.xlu0 %v1180_v20 }
 0x448   :  { %s1959_s6 = spop %1958 }
 0x449   :  { %s1011_s18 = smul.f32 0.125, %s1959_s6 }
 0x44b   :  { %1013 = sst [smem:[#allocation12]] %s1011_s18 }
 0x4a1   :  { %v1182_v21 = vpop.xlane.xlu0 %1181 }
 0x4a2   :  { %v1183_v22 = vadd.f32 1e-09, %v1182_v21 }
 0x4a4   :  { %2008 = vrcp.f32 %v1183_v22 }
 0x4b1   :  { %v2009_v23 = vpop.eup %2008 }
 0x4b2   :  { %v1185_v25 = vmul.f32 %v2009_v23, %v1183_v22 }
 0x4b4   :  { %v1186_v28 = vsub.f32 2.0, %v1185_v25 }
 0x4b6   :  { %v1187_v29 = vmul.f32 %v2009_v23, %v1186_v28 }
 0x4b8   :  { %v1188_v30 = vmul.f32 %v1187_v29, %v1179_v19 }
 0x4ba   :  { %1189 = vst.msk [vmem:[#allocation4] sm:$0xff] %vm884_vm4, %v1188_v30 }
 0x4c1   :  { %v1211_v31 = vld [vmem:[#allocation4] sm:$0x1] }
 0x4c2   :  { %1212 = vst [vmem:[%s1191_s22] sm:$0x1] %v1211_v31 }
 0x4c3   :  { %1238 = vsyncadd [#allocation5 + $0x1], 16  ;;  %s1939_s23 = sld [smem:[#allocation10 + $0x1]]  ;;  %v1260_v32 = vld [vmem:[#allocation4 + $0x1] sm:$0x1] }
 0x4c9   :  { %s1241_s25 = scalar_lea.vmem %s2381_s16, %s1939_s23 }
 0x4ca   :  { %1261 = vst [vmem:[%s1241_s25] sm:$0x1] %v1260_v32 }
 0x4cb   :  { %1287 = vsyncadd [#allocation5 + $0x1], 16  ;;  %s1940_s13 = sld [smem:[#allocation10 + $0x2]]  ;;  %v1309_v27 = vld [vmem:[#allocation4 + $0x2] sm:$0x1] }
 0x4d1   :  { %s1290_s28 = scalar_lea.vmem %s2381_s16, %s1940_s13 }
 0x4d2   :  { %1310 = vst [vmem:[%s1290_s28] sm:$0x1] %v1309_v27 }
 0x4d3   :  { %1336 = vsyncadd [#allocation5 + $0x1], 16  ;;  %s1941_s7 = sld [smem:[#allocation10 + $0x3]]  ;;  %v1358_v33 = vld [vmem:[#allocation4 + $0x3] sm:$0x1] }
 0x4d9   :  { %s1339_s30 = scalar_lea.vmem %s2381_s16, %s1941_s7 }
 0x4da   :  { %1359 = vst [vmem:[%s1339_s30] sm:$0x1] %v1358_v33 }
 0x4db   :  { %1385 = vsyncadd [#allocation5 + $0x1], 16  ;;  %s1942_s9 = sld [smem:[#allocation10 + $0x4]]  ;;  %v1407_v34 = vld [vmem:[#allocation4 + $0x4] sm:$0x1] }
 0x4e1   :  { %s1388_s29 = scalar_lea.vmem %s2381_s16, %s1942_s9 }
 0x4e2   :  { %1408 = vst [vmem:[%s1388_s29] sm:$0x1] %v1407_v34 }
 0x4e3   :  { %1434 = vsyncadd [#allocation5 + $0x1], 16  ;;  %s1943_s11 = sld [smem:[#allocation10 + $0x5]]  ;;  %v1456_v35 = vld [vmem:[#allocation4 + $0x5] sm:$0x1] }
 0x4e9   :  { %s1437_s3 = scalar_lea.vmem %s2381_s16, %s1943_s11 }
 0x4ea   :  { %1457 = vst [vmem:[%s1437_s3] sm:$0x1] %v1456_v35 }
 0x4eb   :  { %1483 = vsyncadd [#allocation5 + $0x1], 16  ;;  %s1944_s4 = sld [smem:[#allocation10 + $0x6]]  ;;  %v1505_v36 = vld [vmem:[#allocation4 + $0x6] sm:$0x1] }
 0x4f1   :  { %s1486_s18 = scalar_lea.vmem %s2381_s16, %s1944_s4 }
 0x4f2   :  { %1506 = vst [vmem:[%s1486_s18] sm:$0x1] %v1505_v36 }
 0x4f3   :  { %1532 = vsyncadd [#allocation5 + $0x1], 16  ;;  %s1945_s20 = sld [smem:[#allocation10 + $0x7]]  ;;  %v1554_v37 = vld [vmem:[#allocation4 + $0x7] sm:$0x1] }
 0x4f9   :  { %s1535_s22 = scalar_lea.vmem %s2381_s16, %s1945_s20 }
 0x4fa   :  { %1555 = vst [vmem:[%s1535_s22] sm:$0x1] %v1554_v37 }
 0x4fb   :  { %1581 = vsyncadd [#allocation5 + $0x1], 16 }
 0x4fc   :  { %2068 = dma.done.wait [#allocation5 + $0x1], 128 }
 0x4fd   :  { %2069 = vsyncadd [#allocation5 + $0x1], 4294967168  ;;  %s2078_s23 = smov [#allocation12]   ;;  %s2079_s25 = smov [#allocation13]  }
 0x4fe   :  { %1605 = dma.smem_to_hbm %s2078_s23, 16, %s2379_s14, [#allocation8]  }
 0x4ff   :  { %s1612_s13 = sshll.u32 %s2079_s25, 4  ;;  %s1613_s13 = int_to_ptr.vmem [resolvable:$true] %s1612_s13 }
 0x500   :  { %s2042_s27 = scalar_lea.vmem %s1613_s13, 16  ;;  %s2046_s26 = scalar_lea.vmem %s1613_s13, 32 }
 0x501   :  { %p2043_p10 = scmp.ne.s32.totalorder %s1613_s13, %s2042_s27  ;;  %p2047_p11 = scmp.lt.s32.totalorder %s1613_s13, %s1613_s13 }
 0x502   :  { %p2048_p12 = scmp.lt.s32.totalorder %s2046_s26, %s2042_s27 }
 0x504   :  { %p2049_p13 = por %p2048_p12, %p2047_p11 }
 0x506   :  { %p2050_p0 = pnand %p2049_p13, %p2043_p10 }
 0x508   :  { %2053 = shalt.err (!%p2050_p0)
}
 0x509   :  { %1615 = dma.vmem_to_hbm [thread:$0]  %s1613_s13, 16, %s2380_s15, [#allocation7]  }
 0x50a   :  { %2070 = dma.done.wait [#allocation8], 16  }
 0x50b   :  { %2071 = vsyncadd [#allocation8], 4294967280 }
 0x50c   :  { %2072 = dma.done.wait [#allocation7], 16  }
 0x50d   :  { %2073 = vsyncadd [#allocation7], 4294967280 }
 0x50e   :  { %1622 = sfence }
 0x50f   :  { %1623 = vsyncpa [#allocation7], 1 }
 0x510   :  { %1624 = vsyncpa [#allocation8], 1 }
 0x511   :  { %1625 = vsyncpa [#allocation9], 1 }
 0x512   :  { %1626 = vsyncpa [#allocation11], 1 }
 0x513   :  { %1627 = vsyncmov [#allocation5] }
 0x516   :  { %s1628_s14 = vpop.sfrf %1627 }
 0x517   :  { %p1946_p1 = scmp.ne.s32.totalorder %s1628_s14, 0 }
 0x519   :  { %1632 = shalt.err (%p1946_p1)  }
 0x51a   :  { %1634 = vsyncmov [#allocation5 + $0x1] }
 0x51d   :  { %s1635_s7 = vpop.sfrf %1634 }
 0x51e   :  { %p1947_p2 = scmp.ne.s32.totalorder %s1635_s7, 0 }
 0x520   :  { %1639 = shalt.err (%p1947_p2)  }

</bundles_post_ra>
